<compile_context>
chip_gen: v7x
topology: tpu7x:2x2x1
jax: 0.10.0
libtpu: 0.0.40
codegen_flags: <defaults>
</compile_context>

<pallas_src>
import math
import jax
import jax.numpy as jnp
from jax.experimental import pallas as pl
from jax.experimental.pallas import tpu as pltpu


def _round_up(v, m):
    return -(-v // m) * m


# ----------------------------- fused Pallas kernel -------------------------- #

def _make_fused_kernel(n_layers):
    """Kernel args: x, h0, c0, (w_ih_t, w_hh_t, b) * n_layers, fc_w_t, fc_b
                    -> sig, h_n, c_n ; scratch: pre (T,Bp,4Hp), seq (T,Bp,Hp)."""
    assert n_layers >= 1

    def kernel(*refs):
        n_in = 3 + 3 * n_layers + 2
        x_ref, h0_ref, c0_ref = refs[0], refs[1], refs[2]
        layer_refs = refs[3:3 + 3 * n_layers]
        fcw_ref, fcb_ref = refs[3 + 3 * n_layers], refs[4 + 3 * n_layers]
        sig_ref, hN_ref, cN_ref = refs[n_in], refs[n_in + 1], refs[n_in + 2]
        pre_scratch, seq_scratch = refs[n_in + 3], refs[n_in + 4]

        T, Bp, _ = x_ref.shape
        Hp = h0_ref.shape[-1]
        G = 4 * Hp

        cur_in_ref = x_ref          # sequence input to the current layer
        last_h = None
        for l in range(n_layers):
            wih_ref = layer_refs[3 * l + 0]
            whh_ref = layer_refs[3 * l + 1]
            b_ref = layer_refs[3 * l + 2]
            din = wih_ref.shape[0]

            # Hoisted input projection for the whole sequence: one MXU-friendly
            # GEMM with T*Bp rows, bias folded in, result parked in VMEM scratch.
            x_all = cur_in_ref[...].reshape(T * Bp, din)
            pre = jnp.dot(x_all, wih_ref[...],
                          preferred_element_type=jnp.float32) + b_ref[...]
            pre_scratch[...] = pre.reshape(T, Bp, G)

            write_seq = (l + 1 < n_layers)   # last layer only needs final h

            def step(t, carry, whh_ref=whh_ref, write_seq=write_seq):
                h, c = carry
                # W_hh read inside the step (not a hoisted value): streamed per
                # matmul, never pinned across the unrolled recurrence.
                gates = pre_scratch[t] + jnp.dot(
                    h, whh_ref[...], preferred_element_type=jnp.float32)  # (Bp, 4Hp)
                # Gate pack order is (i, f, o, g): one contiguous sigmoid slab,
                # one tanh slab -> 2 EUP issues per step instead of 4.
                sg = jax.nn.sigmoid(gates[:, 0:3 * Hp])
                i = sg[:, 0 * Hp:1 * Hp]
                f = sg[:, 1 * Hp:2 * Hp]
                o = sg[:, 2 * Hp:3 * Hp]
                g = jnp.tanh(gates[:, 3 * Hp:4 * Hp])
                c_new = f * c + i * g
                h_new = o * jnp.tanh(c_new)
                if write_seq:
                    seq_scratch[t] = h_new
                return (h_new, c_new)

            h_fin, c_fin = jax.lax.fori_loop(
                0, T, step, (h0_ref[l], c0_ref[l]), unroll=True)
            hN_ref[l] = h_fin
            cN_ref[l] = c_fin
            cur_in_ref = seq_scratch
            last_h = h_fin

        # Dropout at inference = identity.  Fused FC + sigmoid head with a
        # lane-dense (Bp, Op=128) output store.
        sig_ref[...] = jax.nn.sigmoid(
            jnp.dot(last_h, fcw_ref[...], preferred_element_type=jnp.float32)
            + fcb_ref[...])

    return kernel


def _fused_rnn_call(xs, h0, c0, layer_params, fc_w_t, fc_b):
    T, Bp, _ = xs.shape
    L, _, Hp = h0.shape
    G = 4 * Hp
    Op = fc_w_t.shape[-1]
    n_layers = len(layer_params)
    vmem = pl.BlockSpec(memory_space=pltpu.MemorySpace.VMEM)

    flat = []
    for lp in layer_params:
        flat += [lp["w_ih_t"], lp["w_hh_t"], lp["b"]]

    # Footprint-derived VMEM limit: inputs + outputs + scratch, 2x headroom,
    # floored at 4 MiB and capped well under v7x's 64 MiB physical VMEM.
    def _nbytes(*arrs):
        return sum(int(a.size) * a.dtype.itemsize for a in arrs)

    footprint = _nbytes(xs, h0, c0, fc_w_t, fc_b, *flat)
    footprint += (Bp * Op + 2 * L * Bp * Hp) * 4          # outputs
    footprint += (T * Bp * G + T * Bp * Hp) * 4           # scratch
    vmem_limit = int(min(max(2 * footprint + (1 << 20), 4 << 20), 48 << 20))

    return pl.pallas_call(
        _make_fused_kernel(n_layers),
        out_shape=(jax.ShapeDtypeStruct((Bp, Op), jnp.float32),
                   jax.ShapeDtypeStruct((L, Bp, Hp), jnp.float32),
                   jax.ShapeDtypeStruct((L, Bp, Hp), jnp.float32)),
        in_specs=[vmem] * (3 + 3 * n_layers + 2),
        out_specs=(vmem, vmem, vmem),
        scratch_shapes=[pltpu.VMEM((T, Bp, G), jnp.float32),   # hoisted X@W_ih
                        pltpu.VMEM((T, Bp, Hp), jnp.float32)], # inter-layer seq
        compiler_params=pltpu.CompilerParams(vmem_limit_bytes=vmem_limit),
    )(xs, h0, c0, *flat, fc_w_t, fc_b)


# ------------------------------ parameters ---------------------------------- #

def init_params(key, vocab_size, output_size, embedding_dim, hidden_dim, n_layers):
    assert n_layers >= 1, "RNN requires at least one LSTM layer"
    H = hidden_dim
    Hp = _round_up(max(H, 1), 32)     # 4*Hp is a 128-lane multiple (lane-dense gates)
    O = output_size
    Op = _round_up(max(O, 1), 128)    # lane-dense FC output (sliced in wrapper)
    scale = 1.0 / math.sqrt(H)

    k = key

    def nxt():
        nonlocal k
        k, sub = jax.random.split(k)
        return sub

    params = {"meta": dict(H=H, Hp=Hp, O=O, Op=Op, E=embedding_dim,
                           n_layers=n_layers)}
    params["embedding"] = (
        jax.random.normal(nxt(), (vocab_size, embedding_dim), jnp.float32) * 0.1)

    # Pack gates in (i, f, o, g) order: contiguous sigmoid slab + tanh slab.
    # PyTorch row order is (i, f, g, o) -> source gate indices below.
    gate_order = (0, 1, 3, 2)

    raw_layers, pad_layers = [], []
    for l in range(n_layers):
        din = embedding_dim if l == 0 else H
        din_p = embedding_dim if l == 0 else Hp
        w_ih = jax.random.uniform(nxt(), (4 * H, din), jnp.float32, -scale, scale)
        w_hh = jax.random.uniform(nxt(), (4 * H, H), jnp.float32, -scale, scale)
        b_ih = jax.random.uniform(nxt(), (4 * H,), jnp.float32, -scale, scale)
        b_hh = jax.random.uniform(nxt(), (4 * H,), jnp.float32, -scale, scale)
        b = b_ih + b_hh
        raw_layers.append(dict(w_ih=w_ih, w_hh=w_hh, b=b))

        # Padded, pre-transposed layouts for the kernel.  Packed gate block `dst`
        # occupies columns [dst*Hp, dst*Hp + H); pad columns/rows stay zero so the
        # pad lanes of h/c provably remain zero through the recurrence.
        w_ih_t = jnp.zeros((din_p, 4 * Hp), jnp.float32)
        w_hh_t = jnp.zeros((Hp, 4 * Hp), jnp.float32)
        b_pad = jnp.zeros((1, 4 * Hp), jnp.float32)
        for dst, src in enumerate(gate_order):
            w_ih_t = w_ih_t.at[:din, dst * Hp:dst * Hp + H].set(
                w_ih[src * H:(src + 1) * H, :].T)
            w_hh_t = w_hh_t.at[:H, dst * Hp:dst * Hp + H].set(
                w_hh[src * H:(src + 1) * H, :].T)
            b_pad = b_pad.at[:, dst * Hp:dst * Hp + H].set(b[src * H:(src + 1) * H])
        pad_layers.append(dict(w_ih_t=w_ih_t, w_hh_t=w_hh_t, b=b_pad))

    w_fc = jax.random.uniform(nxt(), (O, H), jnp.float32, -scale, scale)
    b_fc = jax.random.uniform(nxt(), (O,), jnp.float32, -scale, scale)

    params["lstm"] = pad_layers
    params["fc_w_t"] = jnp.zeros((Hp, Op), jnp.float32).at[:H, :O].set(w_fc.T)
    params["fc_b"] = jnp.zeros((1, Op), jnp.float32).at[:, :O].set(b_fc)
    params["_raw"] = dict(lstm=raw_layers, fc_w=w_fc, fc_b=b_fc)
    return params


# -------------------------------- forward ----------------------------------- #

def rnn_forward(params, x, hidden):
    """x: (B, T) integer token ids; hidden: ((L, B, H), (L, B, H))."""
    meta = params["meta"]
    H, Hp, O, Op = meta["H"], meta["Hp"], meta["O"], meta["Op"]
    B, T = x.shape
    Bp = max(8, _round_up(B, 8))   # fill f32 sublanes; raise real B for throughput

    h0, c0 = hidden
    # Embedding lookup (gather) stays as JAX glue.
    emb = jnp.take(params["embedding"], x.astype(jnp.int32), axis=0)  # (B, T, E)
    xs = jnp.transpose(emb, (1, 0, 2)).astype(jnp.float32)            # (T, B, E)
    xs = jnp.pad(xs, ((0, 0), (0, Bp - B), (0, 0)))
    h0p = jnp.pad(h0.astype(jnp.float32), ((0, 0), (0, Bp - B), (0, Hp - H)))
    c0p = jnp.pad(c0.astype(jnp.float32), ((0, 0), (0, Bp - B), (0, Hp - H)))

    sig_p, hN_p, cN_p = _fused_rnn_call(xs, h0p, c0p, params["lstm"],
                                        params["fc_w_t"], params["fc_b"])
    sig_out = sig_p[:B, :O]
    h_n = hN_p[:, :B, :H]
    c_n = cN_p[:, :B, :H]
    return sig_out, (h_n, c_n)


# -------------------------- pure-JAX reference ------------------------------- #

def rnn_forward_ref(params, x, hidden):
    raw = params["_raw"]
    hp = jax.lax.Precision.HIGHEST
    h0, c0 = hidden
    emb = jnp.take(params["embedding"], x.astype(jnp.int32), axis=0)
    cur = jnp.transpose(emb, (1, 0, 2)).astype(jnp.float32)  # (T, B, E)

    h_list, c_list = [], []
    for l, lp in enumerate(raw["lstm"]):
        H = lp["w_hh"].shape[-1]

        def step(carry, x_t, lp=lp, H=H):
            h, c = carry
            gates = (jnp.dot(x_t, lp["w_ih"].T, precision=hp)
                     + jnp.dot(h, lp["w_hh"].T, precision=hp) + lp["b"])
            i = jax.nn.sigmoid(gates[:, 0 * H:1 * H])
            f = jax.nn.sigmoid(gates[:, 1 * H:2 * H])
            g = jnp.tanh(gates[:, 2 * H:3 * H])
            o = jax.nn.sigmoid(gates[:, 3 * H:4 * H])
            c_new = f * c + i * g
            h_new = o * jnp.tanh(c_new)
            return (h_new, c_new), h_new

        (hN, cN), cur = jax.lax.scan(step, (h0[l], c0[l]), cur)
        h_list.append(hN)
        c_list.append(cN)

    last_h = cur[-1]
    out = jnp.dot(last_h, raw["fc_w"].T, precision=hp) + raw["fc_b"]
    return jax.nn.sigmoid(out), (jnp.stack(h_list), jnp.stack(c_list))


# --------------------------------- main -------------------------------------- #

if __name__ == "__main__":
    vocab_size, output_size = 50, 1
    embedding_dim, hidden_dim, n_layers = 32, 32, 2
    batch, seq = 2, 8

    key = jax.random.PRNGKey(0)
    pkey, xkey = jax.random.split(key)
    params = init_params(pkey, vocab_size, output_size, embedding_dim,
                         hidden_dim, n_layers)

    x = jax.random.randint(xkey, (batch, seq), 0, vocab_size, dtype=jnp.int32)
    hidden = (jnp.zeros((n_layers, batch, hidden_dim), jnp.float32),
              jnp.zeros((n_layers, batch, hidden_dim), jnp.float32))

    sig_out, (h_n, c_n) = rnn_forward(params, x, hidden)
    jax.block_until_ready((sig_out, h_n, c_n))

    assert sig_out.shape == (batch, output_size)
    assert h_n.shape == (n_layers, batch, hidden_dim)
    assert c_n.shape == (n_layers, batch, hidden_dim)

    # Numerical parity with a pure-JAX reference of the same module.
    sig_ref, (h_ref, c_ref) = rnn_forward_ref(params, x, hidden)
    assert jnp.allclose(sig_out, sig_ref, atol=1e-3, rtol=1e-3)
    assert jnp.allclose(h_n, h_ref, atol=1e-3, rtol=1e-3)
    assert jnp.allclose(c_n, c_ref, atol=1e-3, rtol=1e-3)

    print("KERNEL_OK")
</pallas_src>

<mosaic_0001>
module attributes {stable_mosaic.version = 11 : i64} {
  func.func @kernel(%arg0: memref<8x8x32xf32, #tpu.memory_space<vmem>>, %arg1: memref<2x8x32xf32, #tpu.memory_space<vmem>>, %arg2: memref<2x8x32xf32, #tpu.memory_space<vmem>>, %arg3: memref<32x128xf32, #tpu.memory_space<vmem>>, %arg4: memref<32x128xf32, #tpu.memory_space<vmem>>, %arg5: memref<1x128xf32, #tpu.memory_space<vmem>>, %arg6: memref<32x128xf32, #tpu.memory_space<vmem>>, %arg7: memref<32x128xf32, #tpu.memory_space<vmem>>, %arg8: memref<1x128xf32, #tpu.memory_space<vmem>>, %arg9: memref<32x128xf32, #tpu.memory_space<vmem>>, %arg10: memref<1x128xf32, #tpu.memory_space<vmem>>, %arg11: memref<8x128xf32, #tpu.memory_space<vmem>>, %arg12: memref<2x8x32xf32, #tpu.memory_space<vmem>>, %arg13: memref<2x8x32xf32, #tpu.memory_space<vmem>>, %arg14: memref<8x8x128xf32, #tpu.memory_space<vmem>>, %arg15: memref<8x8x32xf32, #tpu.memory_space<vmem>>) attributes {dimension_semantics = [], scalar_prefetch = 0 : i64, scratch_operands = 2 : i64, tpu.core_type = #tpu.core_type<tc>} {
    %c0 = arith.constant 0 : index
    %c0_0 = arith.constant 0 : index
    %c0_1 = arith.constant 0 : index
    %0 = vector.load %arg0[%c0, %c0_0, %c0_1] : memref<8x8x32xf32, #tpu.memory_space<vmem>>, vector<8x8x32xf32>
    %1 = vector.shape_cast %0 : vector<8x8x32xf32> to vector<64x32xf32>
    %c0_2 = arith.constant 0 : index
    %c0_3 = arith.constant 0 : index
    %2 = vector.load %arg3[%c0_2, %c0_3] : memref<32x128xf32, #tpu.memory_space<vmem>>, vector<32x128xf32>
    %cst = arith.constant dense<0.000000e+00> : vector<64x128xf32>
    %3 = tpu.matmul %1, %2, %cst {dimension_numbers = #tpu.dot_dimension_numbers<[1], [0], [0], [1], [0, 0, 1, 1], [], []>} : vector<64x32xf32>, vector<32x128xf32>, vector<64x128xf32> -> vector<64x128xf32>
    %c0_4 = arith.constant 0 : index
    %c0_5 = arith.constant 0 : index
    %4 = vector.load %arg5[%c0_4, %c0_5] : memref<1x128xf32, #tpu.memory_space<vmem>>, vector<1x128xf32>
    %5 = vector.broadcast %4 : vector<1x128xf32> to vector<64x128xf32>
    %6 = arith.addf %3, %5 : vector<64x128xf32>
    %7 = vector.shape_cast %6 : vector<64x128xf32> to vector<8x8x128xf32>
    %c0_6 = arith.constant 0 : index
    %c0_7 = arith.constant 0 : index
    %c0_8 = arith.constant 0 : index
    %8 = vector.load %arg14[%c0_6, %c0_7, %c0_8] : memref<8x8x128xf32, #tpu.memory_space<vmem>>, vector<8x8x128xf32>
    tpu.vector_store %arg14[%c0_6, %c0_7, %c0_8], %7 {strides = array<i32>} : memref<8x8x128xf32, #tpu.memory_space<vmem>>, vector<8x8x128xf32>,
    %c0_9 = arith.constant 0 : index
    %c0_10 = arith.constant 0 : index
    %c0_11 = arith.constant 0 : index
    %9 = vector.load %arg1[%c0_9, %c0_10, %c0_11] : memref<2x8x32xf32, #tpu.memory_space<vmem>>, vector<1x8x32xf32>
    %10 = vector.shape_cast %9 : vector<1x8x32xf32> to vector<8x32xf32>
    %c0_12 = arith.constant 0 : index
    %c0_13 = arith.constant 0 : index
    %c0_14 = arith.constant 0 : index
    %11 = vector.load %arg2[%c0_12, %c0_13, %c0_14] : memref<2x8x32xf32, #tpu.memory_space<vmem>>, vector<1x8x32xf32>
    %12 = vector.shape_cast %11 : vector<1x8x32xf32> to vector<8x32xf32>
    %c0_i32 = arith.constant 0 : i32
    %13 = arith.index_cast %c0_i32 : i32 to index
    %c0_15 = arith.constant 0 : index
    %c0_16 = arith.constant 0 : index
    %14 = vector.load %arg14[%13, %c0_15, %c0_16] : memref<8x8x128xf32, #tpu.memory_space<vmem>>, vector<1x8x128xf32>
    %15 = vector.shape_cast %14 : vector<1x8x128xf32> to vector<8x128xf32>
    %c0_17 = arith.constant 0 : index
    %c0_18 = arith.constant 0 : index
    %16 = vector.load %arg4[%c0_17, %c0_18] : memref<32x128xf32, #tpu.memory_space<vmem>>, vector<32x128xf32>
    %cst_19 = arith.constant dense<0.000000e+00> : vector<8x128xf32>
    %17 = tpu.matmul %10, %16, %cst_19 {dimension_numbers = #tpu.dot_dimension_numbers<[1], [0], [0], [1], [0, 0, 1, 1], [], []>} : vector<8x32xf32>, vector<32x128xf32>, vector<8x128xf32> -> vector<8x128xf32>
    %18 = arith.addf %15, %17 : vector<8x128xf32>
    %19 = vector.extract_strided_slice %18 {offsets = [0, 0], sizes = [8, 96], strides = [1, 1]} : vector<8x128xf32> to vector<8x96xf32>
    %20 = arith.negf %19 : vector<8x96xf32>
    %21 = math.exp %20 : vector<8x96xf32>
    %cst_20 = arith.constant 1.000000e+00 : f32
    %22 = vector.broadcast %cst_20 : f32 to vector<8x96xf32>
    %23 = arith.addf %22, %21 : vector<8x96xf32>
    %24 = arith.divf %22, %23 : vector<8x96xf32>
    %25 = vector.extract_strided_slice %24 {offsets = [0, 0], sizes = [8, 32], strides = [1, 1]} : vector<8x96xf32> to vector<8x32xf32>
    %26 = vector.extract_strided_slice %24 {offsets = [0, 32], sizes = [8, 32], strides = [1, 1]} : vector<8x96xf32> to vector<8x32xf32>
    %27 = vector.extract_strided_slice %24 {offsets = [0, 64], sizes = [8, 32], strides = [1, 1]} : vector<8x96xf32> to vector<8x32xf32>
    %28 = vector.extract_strided_slice %18 {offsets = [0, 96], sizes = [8, 32], strides = [1, 1]} : vector<8x128xf32> to vector<8x32xf32>
    %29 = math.tanh %28 : vector<8x32xf32>
    %30 = arith.mulf %26, %12 : vector<8x32xf32>
    %31 = arith.mulf %25, %29 : vector<8x32xf32>
    %32 = arith.addf %30, %31 : vector<8x32xf32>
    %33 = math.tanh %32 : vector<8x32xf32>
    %34 = arith.mulf %27, %33 : vector<8x32xf32>
    %35 = arith.index_cast %c0_i32 : i32 to index
    %c0_21 = arith.constant 0 : index
    %c0_22 = arith.constant 0 : index
    %36 = vector.load %arg15[%35, %c0_21, %c0_22] : memref<8x8x32xf32, #tpu.memory_space<vmem>>, vector<1x8x32xf32>
    %37 = vector.shape_cast %36 : vector<1x8x32xf32> to vector<8x32xf32>
    %38 = vector.shape_cast %34 : vector<8x32xf32> to vector<1x8x32xf32>
    tpu.vector_store %arg15[%35, %c0_21, %c0_22], %38 {strides = array<i32>} : memref<8x8x32xf32, #tpu.memory_space<vmem>>, vector<1x8x32xf32>,
    %c1_i32 = arith.constant 1 : i32
    %39 = arith.index_cast %c1_i32 : i32 to index
    %c0_23 = arith.constant 0 : index
    %c0_24 = arith.constant 0 : index
    %40 = vector.load %arg14[%39, %c0_23, %c0_24] : memref<8x8x128xf32, #tpu.memory_space<vmem>>, vector<1x8x128xf32>
    %41 = vector.shape_cast %40 : vector<1x8x128xf32> to vector<8x128xf32>
    %c0_25 = arith.constant 0 : index
    %c0_26 = arith.constant 0 : index
    %42 = vector.load %arg4[%c0_25, %c0_26] : memref<32x128xf32, #tpu.memory_space<vmem>>, vector<32x128xf32>
    %cst_27 = arith.constant dense<0.000000e+00> : vector<8x128xf32>
    %43 = tpu.matmul %34, %42, %cst_27 {dimension_numbers = #tpu.dot_dimension_numbers<[1], [0], [0], [1], [0, 0, 1, 1], [], []>} : vector<8x32xf32>, vector<32x128xf32>, vector<8x128xf32> -> vector<8x128xf32>
    %44 = arith.addf %41, %43 : vector<8x128xf32>
    %45 = vector.extract_strided_slice %44 {offsets = [0, 0], sizes = [8, 96], strides = [1, 1]} : vector<8x128xf32> to vector<8x96xf32>
    %46 = arith.negf %45 : vector<8x96xf32>
    %47 = math.exp %46 : vector<8x96xf32>
    %cst_28 = arith.constant 1.000000e+00 : f32
    %48 = vector.broadcast %cst_28 : f32 to vector<8x96xf32>
    %49 = arith.addf %48, %47 : vector<8x96xf32>
    %50 = arith.divf %48, %49 : vector<8x96xf32>
    %51 = vector.extract_strided_slice %50 {offsets = [0, 0], sizes = [8, 32], strides = [1, 1]} : vector<8x96xf32> to vector<8x32xf32>
    %52 = vector.extract_strided_slice %50 {offsets = [0, 32], sizes = [8, 32], strides = [1, 1]} : vector<8x96xf32> to vector<8x32xf32>
    %53 = vector.extract_strided_slice %50 {offsets = [0, 64], sizes = [8, 32], strides = [1, 1]} : vector<8x96xf32> to vector<8x32xf32>
    %54 = vector.extract_strided_slice %44 {offsets = [0, 96], sizes = [8, 32], strides = [1, 1]} : vector<8x128xf32> to vector<8x32xf32>
    %55 = math.tanh %54 : vector<8x32xf32>
    %56 = arith.mulf %52, %32 : vector<8x32xf32>
    %57 = arith.mulf %51, %55 : vector<8x32xf32>
    %58 = arith.addf %56, %57 : vector<8x32xf32>
    %59 = math.tanh %58 : vector<8x32xf32>
    %60 = arith.mulf %53, %59 : vector<8x32xf32>
    %61 = arith.index_cast %c1_i32 : i32 to index
    %c0_29 = arith.constant 0 : index
    %c0_30 = arith.constant 0 : index
    %62 = vector.load %arg15[%61, %c0_29, %c0_30] : memref<8x8x32xf32, #tpu.memory_space<vmem>>, vector<1x8x32xf32>
    %63 = vector.shape_cast %62 : vector<1x8x32xf32> to vector<8x32xf32>
    %64 = vector.shape_cast %60 : vector<8x32xf32> to vector<1x8x32xf32>
    tpu.vector_store %arg15[%61, %c0_29, %c0_30], %64 {strides = array<i32>} : memref<8x8x32xf32, #tpu.memory_space<vmem>>, vector<1x8x32xf32>,
    %c2_i32 = arith.constant 2 : i32
    %65 = arith.index_cast %c2_i32 : i32 to index
    %c0_31 = arith.constant 0 : index
    %c0_32 = arith.constant 0 : index
    %66 = vector.load %arg14[%65, %c0_31, %c0_32] : memref<8x8x128xf32, #tpu.memory_space<vmem>>, vector<1x8x128xf32>
    %67 = vector.shape_cast %66 : vector<1x8x128xf32> to vector<8x128xf32>
    %c0_33 = arith.constant 0 : index
    %c0_34 = arith.constant 0 : index
    %68 = vector.load %arg4[%c0_33, %c0_34] : memref<32x128xf32, #tpu.memory_space<vmem>>, vector<32x128xf32>
    %cst_35 = arith.constant dense<0.000000e+00> : vector<8x128xf32>
    %69 = tpu.matmul %60, %68, %cst_35 {dimension_numbers = #tpu.dot_dimension_numbers<[1], [0], [0], [1], [0, 0, 1, 1], [], []>} : vector<8x32xf32>, vector<32x128xf32>, vector<8x128xf32> -> vector<8x128xf32>
    %70 = arith.addf %67, %69 : vector<8x128xf32>
    %71 = vector.extract_strided_slice %70 {offsets = [0, 0], sizes = [8, 96], strides = [1, 1]} : vector<8x128xf32> to vector<8x96xf32>
    %72 = arith.negf %71 : vector<8x96xf32>
    %73 = math.exp %72 : vector<8x96xf32>
    %cst_36 = arith.constant 1.000000e+00 : f32
    %74 = vector.broadcast %cst_36 : f32 to vector<8x96xf32>
    %75 = arith.addf %74, %73 : vector<8x96xf32>
    %76 = arith.divf %74, %75 : vector<8x96xf32>
    %77 = vector.extract_strided_slice %76 {offsets = [0, 0], sizes = [8, 32], strides = [1, 1]} : vector<8x96xf32> to vector<8x32xf32>
    %78 = vector.extract_strided_slice %76 {offsets = [0, 32], sizes = [8, 32], strides = [1, 1]} : vector<8x96xf32> to vector<8x32xf32>
    %79 = vector.extract_strided_slice %76 {offsets = [0, 64], sizes = [8, 32], strides = [1, 1]} : vector<8x96xf32> to vector<8x32xf32>
    %80 = vector.extract_strided_slice %70 {offsets = [0, 96], sizes = [8, 32], strides = [1, 1]} : vector<8x128xf32> to vector<8x32xf32>
    %81 = math.tanh %80 : vector<8x32xf32>
    %82 = arith.mulf %78, %58 : vector<8x32xf32>
    %83 = arith.mulf %77, %81 : vector<8x32xf32>
    %84 = arith.addf %82, %83 : vector<8x32xf32>
    %85 = math.tanh %84 : vector<8x32xf32>
    %86 = arith.mulf %79, %85 : vector<8x32xf32>
    %87 = arith.index_cast %c2_i32 : i32 to index
    %c0_37 = arith.constant 0 : index
    %c0_38 = arith.constant 0 : index
    %88 = vector.load %arg15[%87, %c0_37, %c0_38] : memref<8x8x32xf32, #tpu.memory_space<vmem>>, vector<1x8x32xf32>
    %89 = vector.shape_cast %88 : vector<1x8x32xf32> to vector<8x32xf32>
    %90 = vector.shape_cast %86 : vector<8x32xf32> to vector<1x8x32xf32>
    tpu.vector_store %arg15[%87, %c0_37, %c0_38], %90 {strides = array<i32>} : memref<8x8x32xf32, #tpu.memory_space<vmem>>, vector<1x8x32xf32>,
    %c3_i32 = arith.constant 3 : i32
    %91 = arith.index_cast %c3_i32 : i32 to index
    %c0_39 = arith.constant 0 : index
    %c0_40 = arith.constant 0 : index
    %92 = vector.load %arg14[%91, %c0_39, %c0_40] : memref<8x8x128xf32, #tpu.memory_space<vmem>>, vector<1x8x128xf32>
    %93 = vector.shape_cast %92 : vector<1x8x128xf32> to vector<8x128xf32>
    %c0_41 = arith.constant 0 : index
    %c0_42 = arith.constant 0 : index
    %94 = vector.load %arg4[%c0_41, %c0_42] : memref<32x128xf32, #tpu.memory_space<vmem>>, vector<32x128xf32>
    %cst_43 = arith.constant dense<0.000000e+00> : vector<8x128xf32>
    %95 = tpu.matmul %86, %94, %cst_43 {dimension_numbers = #tpu.dot_dimension_numbers<[1], [0], [0], [1], [0, 0, 1, 1], [], []>} : vector<8x32xf32>, vector<32x128xf32>, vector<8x128xf32> -> vector<8x128xf32>
    %96 = arith.addf %93, %95 : vector<8x128xf32>
    %97 = vector.extract_strided_slice %96 {offsets = [0, 0], sizes = [8, 96], strides = [1, 1]} : vector<8x128xf32> to vector<8x96xf32>
    %98 = arith.negf %97 : vector<8x96xf32>
    %99 = math.exp %98 : vector<8x96xf32>
    %cst_44 = arith.constant 1.000000e+00 : f32
    %100 = vector.broadcast %cst_44 : f32 to vector<8x96xf32>
    %101 = arith.addf %100, %99 : vector<8x96xf32>
    %102 = arith.divf %100, %101 : vector<8x96xf32>
    %103 = vector.extract_strided_slice %102 {offsets = [0, 0], sizes = [8, 32], strides = [1, 1]} : vector<8x96xf32> to vector<8x32xf32>
    %104 = vector.extract_strided_slice %102 {offsets = [0, 32], sizes = [8, 32], strides = [1, 1]} : vector<8x96xf32> to vector<8x32xf32>
    %105 = vector.extract_strided_slice %102 {offsets = [0, 64], sizes = [8, 32], strides = [1, 1]} : vector<8x96xf32> to vector<8x32xf32>
    %106 = vector.extract_strided_slice %96 {offsets = [0, 96], sizes = [8, 32], strides = [1, 1]} : vector<8x128xf32> to vector<8x32xf32>
    %107 = math.tanh %106 : vector<8x32xf32>
    %108 = arith.mulf %104, %84 : vector<8x32xf32>
    %109 = arith.mulf %103, %107 : vector<8x32xf32>
    %110 = arith.addf %108, %109 : vector<8x32xf32>
    %111 = math.tanh %110 : vector<8x32xf32>
    %112 = arith.mulf %105, %111 : vector<8x32xf32>
    %113 = arith.index_cast %c3_i32 : i32 to index
    %c0_45 = arith.constant 0 : index
    %c0_46 = arith.constant 0 : index
    %114 = vector.load %arg15[%113, %c0_45, %c0_46] : memref<8x8x32xf32, #tpu.memory_space<vmem>>, vector<1x8x32xf32>
    %115 = vector.shape_cast %114 : vector<1x8x32xf32> to vector<8x32xf32>
    %116 = vector.shape_cast %112 : vector<8x32xf32> to vector<1x8x32xf32>
    tpu.vector_store %arg15[%113, %c0_45, %c0_46], %116 {strides = array<i32>} : memref<8x8x32xf32, #tpu.memory_space<vmem>>, vector<1x8x32xf32>,
    %c4_i32 = arith.constant 4 : i32
    %117 = arith.index_cast %c4_i32 : i32 to index
    %c0_47 = arith.constant 0 : index
    %c0_48 = arith.constant 0 : index
    %118 = vector.load %arg14[%117, %c0_47, %c0_48] : memref<8x8x128xf32, #tpu.memory_space<vmem>>, vector<1x8x128xf32>
    %119 = vector.shape_cast %118 : vector<1x8x128xf32> to vector<8x128xf32>
    %c0_49 = arith.constant 0 : index
    %c0_50 = arith.constant 0 : index
    %120 = vector.load %arg4[%c0_49, %c0_50] : memref<32x128xf32, #tpu.memory_space<vmem>>, vector<32x128xf32>
    %cst_51 = arith.constant dense<0.000000e+00> : vector<8x128xf32>
    %121 = tpu.matmul %112, %120, %cst_51 {dimension_numbers = #tpu.dot_dimension_numbers<[1], [0], [0], [1], [0, 0, 1, 1], [], []>} : vector<8x32xf32>, vector<32x128xf32>, vector<8x128xf32> -> vector<8x128xf32>
    %122 = arith.addf %119, %121 : vector<8x128xf32>
    %123 = vector.extract_strided_slice %122 {offsets = [0, 0], sizes = [8, 96], strides = [1, 1]} : vector<8x128xf32> to vector<8x96xf32>
    %124 = arith.negf %123 : vector<8x96xf32>
    %125 = math.exp %124 : vector<8x96xf32>
    %cst_52 = arith.constant 1.000000e+00 : f32
    %126 = vector.broadcast %cst_52 : f32 to vector<8x96xf32>
    %127 = arith.addf %126, %125 : vector<8x96xf32>
    %128 = arith.divf %126, %127 : vector<8x96xf32>
    %129 = vector.extract_strided_slice %128 {offsets = [0, 0], sizes = [8, 32], strides = [1, 1]} : vector<8x96xf32> to vector<8x32xf32>
    %130 = vector.extract_strided_slice %128 {offsets = [0, 32], sizes = [8, 32], strides = [1, 1]} : vector<8x96xf32> to vector<8x32xf32>
    %131 = vector.extract_strided_slice %128 {offsets = [0, 64], sizes = [8, 32], strides = [1, 1]} : vector<8x96xf32> to vector<8x32xf32>
    %132 = vector.extract_strided_slice %122 {offsets = [0, 96], sizes = [8, 32], strides = [1, 1]} : vector<8x128xf32> to vector<8x32xf32>
    %133 = math.tanh %132 : vector<8x32xf32>
    %134 = arith.mulf %130, %110 : vector<8x32xf32>
    %135 = arith.mulf %129, %133 : vector<8x32xf32>
    %136 = arith.addf %134, %135 : vector<8x32xf32>
    %137 = math.tanh %136 : vector<8x32xf32>
    %138 = arith.mulf %131, %137 : vector<8x32xf32>
    %139 = arith.index_cast %c4_i32 : i32 to index
    %c0_53 = arith.constant 0 : index
    %c0_54 = arith.constant 0 : index
    %140 = vector.load %arg15[%139, %c0_53, %c0_54] : memref<8x8x32xf32, #tpu.memory_space<vmem>>, vector<1x8x32xf32>
    %141 = vector.shape_cast %140 : vector<1x8x32xf32> to vector<8x32xf32>
    %142 = vector.shape_cast %138 : vector<8x32xf32> to vector<1x8x32xf32>
    tpu.vector_store %arg15[%139, %c0_53, %c0_54], %142 {strides = array<i32>} : memref<8x8x32xf32, #tpu.memory_space<vmem>>, vector<1x8x32xf32>,
    %c5_i32 = arith.constant 5 : i32
    %143 = arith.index_cast %c5_i32 : i32 to index
    %c0_55 = arith.constant 0 : index
    %c0_56 = arith.constant 0 : index
    %144 = vector.load %arg14[%143, %c0_55, %c0_56] : memref<8x8x128xf32, #tpu.memory_space<vmem>>, vector<1x8x128xf32>
    %145 = vector.shape_cast %144 : vector<1x8x128xf32> to vector<8x128xf32>
    %c0_57 = arith.constant 0 : index
    %c0_58 = arith.constant 0 : index
    %146 = vector.load %arg4[%c0_57, %c0_58] : memref<32x128xf32, #tpu.memory_space<vmem>>, vector<32x128xf32>
    %cst_59 = arith.constant dense<0.000000e+00> : vector<8x128xf32>
    %147 = tpu.matmul %138, %146, %cst_59 {dimension_numbers = #tpu.dot_dimension_numbers<[1], [0], [0], [1], [0, 0, 1, 1], [], []>} : vector<8x32xf32>, vector<32x128xf32>, vector<8x128xf32> -> vector<8x128xf32>
    %148 = arith.addf %145, %147 : vector<8x128xf32>
    %149 = vector.extract_strided_slice %148 {offsets = [0, 0], sizes = [8, 96], strides = [1, 1]} : vector<8x128xf32> to vector<8x96xf32>
    %150 = arith.negf %149 : vector<8x96xf32>
    %151 = math.exp %150 : vector<8x96xf32>
    %cst_60 = arith.constant 1.000000e+00 : f32
    %152 = vector.broadcast %cst_60 : f32 to vector<8x96xf32>
    %153 = arith.addf %152, %151 : vector<8x96xf32>
    %154 = arith.divf %152, %153 : vector<8x96xf32>
    %155 = vector.extract_strided_slice %154 {offsets = [0, 0], sizes = [8, 32], strides = [1, 1]} : vector<8x96xf32> to vector<8x32xf32>
    %156 = vector.extract_strided_slice %154 {offsets = [0, 32], sizes = [8, 32], strides = [1, 1]} : vector<8x96xf32> to vector<8x32xf32>
    %157 = vector.extract_strided_slice %154 {offsets = [0, 64], sizes = [8, 32], strides = [1, 1]} : vector<8x96xf32> to vector<8x32xf32>
    %158 = vector.extract_strided_slice %148 {offsets = [0, 96], sizes = [8, 32], strides = [1, 1]} : vector<8x128xf32> to vector<8x32xf32>
    %159 = math.tanh %158 : vector<8x32xf32>
    %160 = arith.mulf %156, %136 : vector<8x32xf32>
    %161 = arith.mulf %155, %159 : vector<8x32xf32>
    %162 = arith.addf %160, %161 : vector<8x32xf32>
    %163 = math.tanh %162 : vector<8x32xf32>
    %164 = arith.mulf %157, %163 : vector<8x32xf32>
    %165 = arith.index_cast %c5_i32 : i32 to index
    %c0_61 = arith.constant 0 : index
    %c0_62 = arith.constant 0 : index
    %166 = vector.load %arg15[%165, %c0_61, %c0_62] : memref<8x8x32xf32, #tpu.memory_space<vmem>>, vector<1x8x32xf32>
    %167 = vector.shape_cast %166 : vector<1x8x32xf32> to vector<8x32xf32>
    %168 = vector.shape_cast %164 : vector<8x32xf32> to vector<1x8x32xf32>
    tpu.vector_store %arg15[%165, %c0_61, %c0_62], %168 {strides = array<i32>} : memref<8x8x32xf32, #tpu.memory_space<vmem>>, vector<1x8x32xf32>,
    %c6_i32 = arith.constant 6 : i32
    %169 = arith.index_cast %c6_i32 : i32 to index
    %c0_63 = arith.constant 0 : index
    %c0_64 = arith.constant 0 : index
    %170 = vector.load %arg14[%169, %c0_63, %c0_64] : memref<8x8x128xf32, #tpu.memory_space<vmem>>, vector<1x8x128xf32>
    %171 = vector.shape_cast %170 : vector<1x8x128xf32> to vector<8x128xf32>
    %c0_65 = arith.constant 0 : index
    %c0_66 = arith.constant 0 : index
    %172 = vector.load %arg4[%c0_65, %c0_66] : memref<32x128xf32, #tpu.memory_space<vmem>>, vector<32x128xf32>
    %cst_67 = arith.constant dense<0.000000e+00> : vector<8x128xf32>
    %173 = tpu.matmul %164, %172, %cst_67 {dimension_numbers = #tpu.dot_dimension_numbers<[1], [0], [0], [1], [0, 0, 1, 1], [], []>} : vector<8x32xf32>, vector<32x128xf32>, vector<8x128xf32> -> vector<8x128xf32>
    %174 = arith.addf %171, %173 : vector<8x128xf32>
    %175 = vector.extract_strided_slice %174 {offsets = [0, 0], sizes = [8, 96], strides = [1, 1]} : vector<8x128xf32> to vector<8x96xf32>
    %176 = arith.negf %175 : vector<8x96xf32>
    %177 = math.exp %176 : vector<8x96xf32>
    %cst_68 = arith.constant 1.000000e+00 : f32
    %178 = vector.broadcast %cst_68 : f32 to vector<8x96xf32>
    %179 = arith.addf %178, %177 : vector<8x96xf32>
    %180 = arith.divf %178, %179 : vector<8x96xf32>
    %181 = vector.extract_strided_slice %180 {offsets = [0, 0], sizes = [8, 32], strides = [1, 1]} : vector<8x96xf32> to vector<8x32xf32>
    %182 = vector.extract_strided_slice %180 {offsets = [0, 32], sizes = [8, 32], strides = [1, 1]} : vector<8x96xf32> to vector<8x32xf32>
    %183 = vector.extract_strided_slice %180 {offsets = [0, 64], sizes = [8, 32], strides = [1, 1]} : vector<8x96xf32> to vector<8x32xf32>
    %184 = vector.extract_strided_slice %174 {offsets = [0, 96], sizes = [8, 32], strides = [1, 1]} : vector<8x128xf32> to vector<8x32xf32>
    %185 = math.tanh %184 : vector<8x32xf32>
    %186 = arith.mulf %182, %162 : vector<8x32xf32>
    %187 = arith.mulf %181, %185 : vector<8x32xf32>
    %188 = arith.addf %186, %187 : vector<8x32xf32>
    %189 = math.tanh %188 : vector<8x32xf32>
    %190 = arith.mulf %183, %189 : vector<8x32xf32>
    %191 = arith.index_cast %c6_i32 : i32 to index
    %c0_69 = arith.constant 0 : index
    %c0_70 = arith.constant 0 : index
    %192 = vector.load %arg15[%191, %c0_69, %c0_70] : memref<8x8x32xf32, #tpu.memory_space<vmem>>, vector<1x8x32xf32>
    %193 = vector.shape_cast %192 : vector<1x8x32xf32> to vector<8x32xf32>
    %194 = vector.shape_cast %190 : vector<8x32xf32> to vector<1x8x32xf32>
    tpu.vector_store %arg15[%191, %c0_69, %c0_70], %194 {strides = array<i32>} : memref<8x8x32xf32, #tpu.memory_space<vmem>>, vector<1x8x32xf32>,
    %c7_i32 = arith.constant 7 : i32
    %195 = arith.index_cast %c7_i32 : i32 to index
    %c0_71 = arith.constant 0 : index
    %c0_72 = arith.constant 0 : index
    %196 = vector.load %arg14[%195, %c0_71, %c0_72] : memref<8x8x128xf32, #tpu.memory_space<vmem>>, vector<1x8x128xf32>
    %197 = vector.shape_cast %196 : vector<1x8x128xf32> to vector<8x128xf32>
    %c0_73 = arith.constant 0 : index
    %c0_74 = arith.constant 0 : index
    %198 = vector.load %arg4[%c0_73, %c0_74] : memref<32x128xf32, #tpu.memory_space<vmem>>, vector<32x128xf32>
    %cst_75 = arith.constant dense<0.000000e+00> : vector<8x128xf32>
    %199 = tpu.matmul %190, %198, %cst_75 {dimension_numbers = #tpu.dot_dimension_numbers<[1], [0], [0], [1], [0, 0, 1, 1], [], []>} : vector<8x32xf32>, vector<32x128xf32>, vector<8x128xf32> -> vector<8x128xf32>
    %200 = arith.addf %197, %199 : vector<8x128xf32>
    %201 = vector.extract_strided_slice %200 {offsets = [0, 0], sizes = [8, 96], strides = [1, 1]} : vector<8x128xf32> to vector<8x96xf32>
    %202 = arith.negf %201 : vector<8x96xf32>
    %203 = math.exp %202 : vector<8x96xf32>
    %cst_76 = arith.constant 1.000000e+00 : f32
    %204 = vector.broadcast %cst_76 : f32 to vector<8x96xf32>
    %205 = arith.addf %204, %203 : vector<8x96xf32>
    %206 = arith.divf %204, %205 : vector<8x96xf32>
    %207 = vector.extract_strided_slice %206 {offsets = [0, 0], sizes = [8, 32], strides = [1, 1]} : vector<8x96xf32> to vector<8x32xf32>
    %208 = vector.extract_strided_slice %206 {offsets = [0, 32], sizes = [8, 32], strides = [1, 1]} : vector<8x96xf32> to vector<8x32xf32>
    %209 = vector.extract_strided_slice %206 {offsets = [0, 64], sizes = [8, 32], strides = [1, 1]} : vector<8x96xf32> to vector<8x32xf32>
    %210 = vector.extract_strided_slice %200 {offsets = [0, 96], sizes = [8, 32], strides = [1, 1]} : vector<8x128xf32> to vector<8x32xf32>
    %211 = math.tanh %210 : vector<8x32xf32>
    %212 = arith.mulf %208, %188 : vector<8x32xf32>
    %213 = arith.mulf %207, %211 : vector<8x32xf32>
    %214 = arith.addf %212, %213 : vector<8x32xf32>
    %215 = math.tanh %214 : vector<8x32xf32>
    %216 = arith.mulf %209, %215 : vector<8x32xf32>
    %217 = arith.index_cast %c7_i32 : i32 to index
    %c0_77 = arith.constant 0 : index
    %c0_78 = arith.constant 0 : index
    %218 = vector.load %arg15[%217, %c0_77, %c0_78] : memref<8x8x32xf32, #tpu.memory_space<vmem>>, vector<1x8x32xf32>
    %219 = vector.shape_cast %218 : vector<1x8x32xf32> to vector<8x32xf32>
    %220 = vector.shape_cast %216 : vector<8x32xf32> to vector<1x8x32xf32>
    tpu.vector_store %arg15[%217, %c0_77, %c0_78], %220 {strides = array<i32>} : memref<8x8x32xf32, #tpu.memory_space<vmem>>, vector<1x8x32xf32>,
    %c8_i32 = arith.constant 8 : i32
    %c0_79 = arith.constant 0 : index
    %c0_80 = arith.constant 0 : index
    %c0_81 = arith.constant 0 : index
    %221 = vector.load %arg12[%c0_79, %c0_80, %c0_81] : memref<2x8x32xf32, #tpu.memory_space<vmem>>, vector<1x8x32xf32>
    %222 = vector.shape_cast %221 : vector<1x8x32xf32> to vector<8x32xf32>
    %223 = vector.shape_cast %216 : vector<8x32xf32> to vector<1x8x32xf32>
    tpu.vector_store %arg12[%c0_79, %c0_80, %c0_81], %223 {strides = array<i32>} : memref<2x8x32xf32, #tpu.memory_space<vmem>>, vector<1x8x32xf32>,
    %c0_82 = arith.constant 0 : index
    %c0_83 = arith.constant 0 : index
    %c0_84 = arith.constant 0 : index
    %224 = vector.load %arg13[%c0_82, %c0_83, %c0_84] : memref<2x8x32xf32, #tpu.memory_space<vmem>>, vector<1x8x32xf32>
    %225 = vector.shape_cast %224 : vector<1x8x32xf32> to vector<8x32xf32>
    %226 = vector.shape_cast %214 : vector<8x32xf32> to vector<1x8x32xf32>
    tpu.vector_store %arg13[%c0_82, %c0_83, %c0_84], %226 {strides = array<i32>} : memref<2x8x32xf32, #tpu.memory_space<vmem>>, vector<1x8x32xf32>,
    %c0_85 = arith.constant 0 : index
    %c0_86 = arith.constant 0 : index
    %c0_87 = arith.constant 0 : index
    %227 = vector.load %arg15[%c0_85, %c0_86, %c0_87] : memref<8x8x32xf32, #tpu.memory_space<vmem>>, vector<8x8x32xf32>
    %228 = vector.shape_cast %227 : vector<8x8x32xf32> to vector<64x32xf32>
    %c0_88 = arith.constant 0 : index
    %c0_89 = arith.constant 0 : index
    %229 = vector.load %arg6[%c0_88, %c0_89] : memref<32x128xf32, #tpu.memory_space<vmem>>, vector<32x128xf32>
    %cst_90 = arith.constant dense<0.000000e+00> : vector<64x128xf32>
    %230 = tpu.matmul %228, %229, %cst_90 {dimension_numbers = #tpu.dot_dimension_numbers<[1], [0], [0], [1], [0, 0, 1, 1], [], []>} : vector<64x32xf32>, vector<32x128xf32>, vector<64x128xf32> -> vector<64x128xf32>
    %c0_91 = arith.constant 0 : index
    %c0_92 = arith.constant 0 : index
    %231 = vector.load %arg8[%c0_91, %c0_92] : memref<1x128xf32, #tpu.memory_space<vmem>>, vector<1x128xf32>
    %232 = vector.broadcast %231 : vector<1x128xf32> to vector<64x128xf32>
    %233 = arith.addf %230, %232 : vector<64x128xf32>
    %234 = vector.shape_cast %233 : vector<64x128xf32> to vector<8x8x128xf32>
    %c0_93 = arith.constant 0 : index
    %c0_94 = arith.constant 0 : index
    %c0_95 = arith.constant 0 : index
    %235 = vector.load %arg14[%c0_93, %c0_94, %c0_95] : memref<8x8x128xf32, #tpu.memory_space<vmem>>, vector<8x8x128xf32>
    tpu.vector_store %arg14[%c0_93, %c0_94, %c0_95], %234 {strides = array<i32>} : memref<8x8x128xf32, #tpu.memory_space<vmem>>, vector<8x8x128xf32>,
    %c1 = arith.constant 1 : index
    %c0_96 = arith.constant 0 : index
    %c0_97 = arith.constant 0 : index
    %236 = vector.load %arg1[%c1, %c0_96, %c0_97] : memref<2x8x32xf32, #tpu.memory_space<vmem>>, vector<1x8x32xf32>
    %237 = vector.shape_cast %236 : vector<1x8x32xf32> to vector<8x32xf32>
    %c1_98 = arith.constant 1 : index
    %c0_99 = arith.constant 0 : index
    %c0_100 = arith.constant 0 : index
    %238 = vector.load %arg2[%c1_98, %c0_99, %c0_100] : memref<2x8x32xf32, #tpu.memory_space<vmem>>, vector<1x8x32xf32>
    %239 = vector.shape_cast %238 : vector<1x8x32xf32> to vector<8x32xf32>
    %c0_i32_101 = arith.constant 0 : i32
    %240 = arith.index_cast %c0_i32_101 : i32 to index
    %c0_102 = arith.constant 0 : index
    %c0_103 = arith.constant 0 : index
    %241 = vector.load %arg14[%240, %c0_102, %c0_103] : memref<8x8x128xf32, #tpu.memory_space<vmem>>, vector<1x8x128xf32>
    %242 = vector.shape_cast %241 : vector<1x8x128xf32> to vector<8x128xf32>
    %c0_104 = arith.constant 0 : index
    %c0_105 = arith.constant 0 : index
    %243 = vector.load %arg7[%c0_104, %c0_105] : memref<32x128xf32, #tpu.memory_space<vmem>>, vector<32x128xf32>
    %cst_106 = arith.constant dense<0.000000e+00> : vector<8x128xf32>
    %244 = tpu.matmul %237, %243, %cst_106 {dimension_numbers = #tpu.dot_dimension_numbers<[1], [0], [0], [1], [0, 0, 1, 1], [], []>} : vector<8x32xf32>, vector<32x128xf32>, vector<8x128xf32> -> vector<8x128xf32>
    %245 = arith.addf %242, %244 : vector<8x128xf32>
    %246 = vector.extract_strided_slice %245 {offsets = [0, 0], sizes = [8, 96], strides = [1, 1]} : vector<8x128xf32> to vector<8x96xf32>
    %247 = arith.negf %246 : vector<8x96xf32>
    %248 = math.exp %247 : vector<8x96xf32>
    %cst_107 = arith.constant 1.000000e+00 : f32
    %249 = vector.broadcast %cst_107 : f32 to vector<8x96xf32>
    %250 = arith.addf %249, %248 : vector<8x96xf32>
    %251 = arith.divf %249, %250 : vector<8x96xf32>
    %252 = vector.extract_strided_slice %251 {offsets = [0, 0], sizes = [8, 32], strides = [1, 1]} : vector<8x96xf32> to vector<8x32xf32>
    %253 = vector.extract_strided_slice %251 {offsets = [0, 32], sizes = [8, 32], strides = [1, 1]} : vector<8x96xf32> to vector<8x32xf32>
    %254 = vector.extract_strided_slice %251 {offsets = [0, 64], sizes = [8, 32], strides = [1, 1]} : vector<8x96xf32> to vector<8x32xf32>
    %255 = vector.extract_strided_slice %245 {offsets = [0, 96], sizes = [8, 32], strides = [1, 1]} : vector<8x128xf32> to vector<8x32xf32>
    %256 = math.tanh %255 : vector<8x32xf32>
    %257 = arith.mulf %253, %239 : vector<8x32xf32>
    %258 = arith.mulf %252, %256 : vector<8x32xf32>
    %259 = arith.addf %257, %258 : vector<8x32xf32>
    %260 = math.tanh %259 : vector<8x32xf32>
    %261 = arith.mulf %254, %260 : vector<8x32xf32>
    %c1_i32_108 = arith.constant 1 : i32
    %262 = arith.index_cast %c1_i32_108 : i32 to index
    %c0_109 = arith.constant 0 : index
    %c0_110 = arith.constant 0 : index
    %263 = vector.load %arg14[%262, %c0_109, %c0_110] : memref<8x8x128xf32, #tpu.memory_space<vmem>>, vector<1x8x128xf32>
    %264 = vector.shape_cast %263 : vector<1x8x128xf32> to vector<8x128xf32>
    %c0_111 = arith.constant 0 : index
    %c0_112 = arith.constant 0 : index
    %265 = vector.load %arg7[%c0_111, %c0_112] : memref<32x128xf32, #tpu.memory_space<vmem>>, vector<32x128xf32>
    %cst_113 = arith.constant dense<0.000000e+00> : vector<8x128xf32>
    %266 = tpu.matmul %261, %265, %cst_113 {dimension_numbers = #tpu.dot_dimension_numbers<[1], [0], [0], [1], [0, 0, 1, 1], [], []>} : vector<8x32xf32>, vector<32x128xf32>, vector<8x128xf32> -> vector<8x128xf32>
    %267 = arith.addf %264, %266 : vector<8x128xf32>
    %268 = vector.extract_strided_slice %267 {offsets = [0, 0], sizes = [8, 96], strides = [1, 1]} : vector<8x128xf32> to vector<8x96xf32>
    %269 = arith.negf %268 : vector<8x96xf32>
    %270 = math.exp %269 : vector<8x96xf32>
    %cst_114 = arith.constant 1.000000e+00 : f32
    %271 = vector.broadcast %cst_114 : f32 to vector<8x96xf32>
    %272 = arith.addf %271, %270 : vector<8x96xf32>
    %273 = arith.divf %271, %272 : vector<8x96xf32>
    %274 = vector.extract_strided_slice %273 {offsets = [0, 0], sizes = [8, 32], strides = [1, 1]} : vector<8x96xf32> to vector<8x32xf32>
    %275 = vector.extract_strided_slice %273 {offsets = [0, 32], sizes = [8, 32], strides = [1, 1]} : vector<8x96xf32> to vector<8x32xf32>
    %276 = vector.extract_strided_slice %273 {offsets = [0, 64], sizes = [8, 32], strides = [1, 1]} : vector<8x96xf32> to vector<8x32xf32>
    %277 = vector.extract_strided_slice %267 {offsets = [0, 96], sizes = [8, 32], strides = [1, 1]} : vector<8x128xf32> to vector<8x32xf32>
    %278 = math.tanh %277 : vector<8x32xf32>
    %279 = arith.mulf %275, %259 : vector<8x32xf32>
    %280 = arith.mulf %274, %278 : vector<8x32xf32>
    %281 = arith.addf %279, %280 : vector<8x32xf32>
    %282 = math.tanh %281 : vector<8x32xf32>
    %283 = arith.mulf %276, %282 : vector<8x32xf32>
    %c2_i32_115 = arith.constant 2 : i32
    %284 = arith.index_cast %c2_i32_115 : i32 to index
    %c0_116 = arith.constant 0 : index
    %c0_117 = arith.constant 0 : index
    %285 = vector.load %arg14[%284, %c0_116, %c0_117] : memref<8x8x128xf32, #tpu.memory_space<vmem>>, vector<1x8x128xf32>
    %286 = vector.shape_cast %285 : vector<1x8x128xf32> to vector<8x128xf32>
    %c0_118 = arith.constant 0 : index
    %c0_119 = arith.constant 0 : index
    %287 = vector.load %arg7[%c0_118, %c0_119] : memref<32x128xf32, #tpu.memory_space<vmem>>, vector<32x128xf32>
    %cst_120 = arith.constant dense<0.000000e+00> : vector<8x128xf32>
    %288 = tpu.matmul %283, %287, %cst_120 {dimension_numbers = #tpu.dot_dimension_numbers<[1], [0], [0], [1], [0, 0, 1, 1], [], []>} : vector<8x32xf32>, vector<32x128xf32>, vector<8x128xf32> -> vector<8x128xf32>
    %289 = arith.addf %286, %288 : vector<8x128xf32>
    %290 = vector.extract_strided_slice %289 {offsets = [0, 0], sizes = [8, 96], strides = [1, 1]} : vector<8x128xf32> to vector<8x96xf32>
    %291 = arith.negf %290 : vector<8x96xf32>
    %292 = math.exp %291 : vector<8x96xf32>
    %cst_121 = arith.constant 1.000000e+00 : f32
    %293 = vector.broadcast %cst_121 : f32 to vector<8x96xf32>
    %294 = arith.addf %293, %292 : vector<8x96xf32>
    %295 = arith.divf %293, %294 : vector<8x96xf32>
    %296 = vector.extract_strided_slice %295 {offsets = [0, 0], sizes = [8, 32], strides = [1, 1]} : vector<8x96xf32> to vector<8x32xf32>
    %297 = vector.extract_strided_slice %295 {offsets = [0, 32], sizes = [8, 32], strides = [1, 1]} : vector<8x96xf32> to vector<8x32xf32>
    %298 = vector.extract_strided_slice %295 {offsets = [0, 64], sizes = [8, 32], strides = [1, 1]} : vector<8x96xf32> to vector<8x32xf32>
    %299 = vector.extract_strided_slice %289 {offsets = [0, 96], sizes = [8, 32], strides = [1, 1]} : vector<8x128xf32> to vector<8x32xf32>
    %300 = math.tanh %299 : vector<8x32xf32>
    %301 = arith.mulf %297, %281 : vector<8x32xf32>
    %302 = arith.mulf %296, %300 : vector<8x32xf32>
    %303 = arith.addf %301, %302 : vector<8x32xf32>
    %304 = math.tanh %303 : vector<8x32xf32>
    %305 = arith.mulf %298, %304 : vector<8x32xf32>
    %c3_i32_122 = arith.constant 3 : i32
    %306 = arith.index_cast %c3_i32_122 : i32 to index
    %c0_123 = arith.constant 0 : index
    %c0_124 = arith.constant 0 : index
    %307 = vector.load %arg14[%306, %c0_123, %c0_124] : memref<8x8x128xf32, #tpu.memory_space<vmem>>, vector<1x8x128xf32>
    %308 = vector.shape_cast %307 : vector<1x8x128xf32> to vector<8x128xf32>
    %c0_125 = arith.constant 0 : index
    %c0_126 = arith.constant 0 : index
    %309 = vector.load %arg7[%c0_125, %c0_126] : memref<32x128xf32, #tpu.memory_space<vmem>>, vector<32x128xf32>
    %cst_127 = arith.constant dense<0.000000e+00> : vector<8x128xf32>
    %310 = tpu.matmul %305, %309, %cst_127 {dimension_numbers = #tpu.dot_dimension_numbers<[1], [0], [0], [1], [0, 0, 1, 1], [], []>} : vector<8x32xf32>, vector<32x128xf32>, vector<8x128xf32> -> vector<8x128xf32>
    %311 = arith.addf %308, %310 : vector<8x128xf32>
    %312 = vector.extract_strided_slice %311 {offsets = [0, 0], sizes = [8, 96], strides = [1, 1]} : vector<8x128xf32> to vector<8x96xf32>
    %313 = arith.negf %312 : vector<8x96xf32>
    %314 = math.exp %313 : vector<8x96xf32>
    %cst_128 = arith.constant 1.000000e+00 : f32
    %315 = vector.broadcast %cst_128 : f32 to vector<8x96xf32>
    %316 = arith.addf %315, %314 : vector<8x96xf32>
    %317 = arith.divf %315, %316 : vector<8x96xf32>
    %318 = vector.extract_strided_slice %317 {offsets = [0, 0], sizes = [8, 32], strides = [1, 1]} : vector<8x96xf32> to vector<8x32xf32>
    %319 = vector.extract_strided_slice %317 {offsets = [0, 32], sizes = [8, 32], strides = [1, 1]} : vector<8x96xf32> to vector<8x32xf32>
    %320 = vector.extract_strided_slice %317 {offsets = [0, 64], sizes = [8, 32], strides = [1, 1]} : vector<8x96xf32> to vector<8x32xf32>
    %321 = vector.extract_strided_slice %311 {offsets = [0, 96], sizes = [8, 32], strides = [1, 1]} : vector<8x128xf32> to vector<8x32xf32>
    %322 = math.tanh %321 : vector<8x32xf32>
    %323 = arith.mulf %319, %303 : vector<8x32xf32>
    %324 = arith.mulf %318, %322 : vector<8x32xf32>
    %325 = arith.addf %323, %324 : vector<8x32xf32>
    %326 = math.tanh %325 : vector<8x32xf32>
    %327 = arith.mulf %320, %326 : vector<8x32xf32>
    %c4_i32_129 = arith.constant 4 : i32
    %328 = arith.index_cast %c4_i32_129 : i32 to index
    %c0_130 = arith.constant 0 : index
    %c0_131 = arith.constant 0 : index
    %329 = vector.load %arg14[%328, %c0_130, %c0_131] : memref<8x8x128xf32, #tpu.memory_space<vmem>>, vector<1x8x128xf32>
    %330 = vector.shape_cast %329 : vector<1x8x128xf32> to vector<8x128xf32>
    %c0_132 = arith.constant 0 : index
    %c0_133 = arith.constant 0 : index
    %331 = vector.load %arg7[%c0_132, %c0_133] : memref<32x128xf32, #tpu.memory_space<vmem>>, vector<32x128xf32>
    %cst_134 = arith.constant dense<0.000000e+00> : vector<8x128xf32>
    %332 = tpu.matmul %327, %331, %cst_134 {dimension_numbers = #tpu.dot_dimension_numbers<[1], [0], [0], [1], [0, 0, 1, 1], [], []>} : vector<8x32xf32>, vector<32x128xf32>, vector<8x128xf32> -> vector<8x128xf32>
    %333 = arith.addf %330, %332 : vector<8x128xf32>
    %334 = vector.extract_strided_slice %333 {offsets = [0, 0], sizes = [8, 96], strides = [1, 1]} : vector<8x128xf32> to vector<8x96xf32>
    %335 = arith.negf %334 : vector<8x96xf32>
    %336 = math.exp %335 : vector<8x96xf32>
    %cst_135 = arith.constant 1.000000e+00 : f32
    %337 = vector.broadcast %cst_135 : f32 to vector<8x96xf32>
    %338 = arith.addf %337, %336 : vector<8x96xf32>
    %339 = arith.divf %337, %338 : vector<8x96xf32>
    %340 = vector.extract_strided_slice %339 {offsets = [0, 0], sizes = [8, 32], strides = [1, 1]} : vector<8x96xf32> to vector<8x32xf32>
    %341 = vector.extract_strided_slice %339 {offsets = [0, 32], sizes = [8, 32], strides = [1, 1]} : vector<8x96xf32> to vector<8x32xf32>
    %342 = vector.extract_strided_slice %339 {offsets = [0, 64], sizes = [8, 32], strides = [1, 1]} : vector<8x96xf32> to vector<8x32xf32>
    %343 = vector.extract_strided_slice %333 {offsets = [0, 96], sizes = [8, 32], strides = [1, 1]} : vector<8x128xf32> to vector<8x32xf32>
    %344 = math.tanh %343 : vector<8x32xf32>
    %345 = arith.mulf %341, %325 : vector<8x32xf32>
    %346 = arith.mulf %340, %344 : vector<8x32xf32>
    %347 = arith.addf %345, %346 : vector<8x32xf32>
    %348 = math.tanh %347 : vector<8x32xf32>
    %349 = arith.mulf %342, %348 : vector<8x32xf32>
    %c5_i32_136 = arith.constant 5 : i32
    %350 = arith.index_cast %c5_i32_136 : i32 to index
    %c0_137 = arith.constant 0 : index
    %c0_138 = arith.constant 0 : index
    %351 = vector.load %arg14[%350, %c0_137, %c0_138] : memref<8x8x128xf32, #tpu.memory_space<vmem>>, vector<1x8x128xf32>
    %352 = vector.shape_cast %351 : vector<1x8x128xf32> to vector<8x128xf32>
    %c0_139 = arith.constant 0 : index
    %c0_140 = arith.constant 0 : index
    %353 = vector.load %arg7[%c0_139, %c0_140] : memref<32x128xf32, #tpu.memory_space<vmem>>, vector<32x128xf32>
    %cst_141 = arith.constant dense<0.000000e+00> : vector<8x128xf32>
    %354 = tpu.matmul %349, %353, %cst_141 {dimension_numbers = #tpu.dot_dimension_numbers<[1], [0], [0], [1], [0, 0, 1, 1], [], []>} : vector<8x32xf32>, vector<32x128xf32>, vector<8x128xf32> -> vector<8x128xf32>
    %355 = arith.addf %352, %354 : vector<8x128xf32>
    %356 = vector.extract_strided_slice %355 {offsets = [0, 0], sizes = [8, 96], strides = [1, 1]} : vector<8x128xf32> to vector<8x96xf32>
    %357 = arith.negf %356 : vector<8x96xf32>
    %358 = math.exp %357 : vector<8x96xf32>
    %cst_142 = arith.constant 1.000000e+00 : f32
    %359 = vector.broadcast %cst_142 : f32 to vector<8x96xf32>
    %360 = arith.addf %359, %358 : vector<8x96xf32>
    %361 = arith.divf %359, %360 : vector<8x96xf32>
    %362 = vector.extract_strided_slice %361 {offsets = [0, 0], sizes = [8, 32], strides = [1, 1]} : vector<8x96xf32> to vector<8x32xf32>
    %363 = vector.extract_strided_slice %361 {offsets = [0, 32], sizes = [8, 32], strides = [1, 1]} : vector<8x96xf32> to vector<8x32xf32>
    %364 = vector.extract_strided_slice %361 {offsets = [0, 64], sizes = [8, 32], strides = [1, 1]} : vector<8x96xf32> to vector<8x32xf32>
    %365 = vector.extract_strided_slice %355 {offsets = [0, 96], sizes = [8, 32], strides = [1, 1]} : vector<8x128xf32> to vector<8x32xf32>
    %366 = math.tanh %365 : vector<8x32xf32>
    %367 = arith.mulf %363, %347 : vector<8x32xf32>
    %368 = arith.mulf %362, %366 : vector<8x32xf32>
    %369 = arith.addf %367, %368 : vector<8x32xf32>
    %370 = math.tanh %369 : vector<8x32xf32>
    %371 = arith.mulf %364, %370 : vector<8x32xf32>
    %c6_i32_143 = arith.constant 6 : i32
    %372 = arith.index_cast %c6_i32_143 : i32 to index
    %c0_144 = arith.constant 0 : index
    %c0_145 = arith.constant 0 : index
    %373 = vector.load %arg14[%372, %c0_144, %c0_145] : memref<8x8x128xf32, #tpu.memory_space<vmem>>, vector<1x8x128xf32>
    %374 = vector.shape_cast %373 : vector<1x8x128xf32> to vector<8x128xf32>
    %c0_146 = arith.constant 0 : index
    %c0_147 = arith.constant 0 : index
    %375 = vector.load %arg7[%c0_146, %c0_147] : memref<32x128xf32, #tpu.memory_space<vmem>>, vector<32x128xf32>
    %cst_148 = arith.constant dense<0.000000e+00> : vector<8x128xf32>
    %376 = tpu.matmul %371, %375, %cst_148 {dimension_numbers = #tpu.dot_dimension_numbers<[1], [0], [0], [1], [0, 0, 1, 1], [], []>} : vector<8x32xf32>, vector<32x128xf32>, vector<8x128xf32> -> vector<8x128xf32>
    %377 = arith.addf %374, %376 : vector<8x128xf32>
    %378 = vector.extract_strided_slice %377 {offsets = [0, 0], sizes = [8, 96], strides = [1, 1]} : vector<8x128xf32> to vector<8x96xf32>
    %379 = arith.negf %378 : vector<8x96xf32>
    %380 = math.exp %379 : vector<8x96xf32>
    %cst_149 = arith.constant 1.000000e+00 : f32
    %381 = vector.broadcast %cst_149 : f32 to vector<8x96xf32>
    %382 = arith.addf %381, %380 : vector<8x96xf32>
    %383 = arith.divf %381, %382 : vector<8x96xf32>
    %384 = vector.extract_strided_slice %383 {offsets = [0, 0], sizes = [8, 32], strides = [1, 1]} : vector<8x96xf32> to vector<8x32xf32>
    %385 = vector.extract_strided_slice %383 {offsets = [0, 32], sizes = [8, 32], strides = [1, 1]} : vector<8x96xf32> to vector<8x32xf32>
    %386 = vector.extract_strided_slice %383 {offsets = [0, 64], sizes = [8, 32], strides = [1, 1]} : vector<8x96xf32> to vector<8x32xf32>
    %387 = vector.extract_strided_slice %377 {offsets = [0, 96], sizes = [8, 32], strides = [1, 1]} : vector<8x128xf32> to vector<8x32xf32>
    %388 = math.tanh %387 : vector<8x32xf32>
    %389 = arith.mulf %385, %369 : vector<8x32xf32>
    %390 = arith.mulf %384, %388 : vector<8x32xf32>
    %391 = arith.addf %389, %390 : vector<8x32xf32>
    %392 = math.tanh %391 : vector<8x32xf32>
    %393 = arith.mulf %386, %392 : vector<8x32xf32>
    %c7_i32_150 = arith.constant 7 : i32
    %394 = arith.index_cast %c7_i32_150 : i32 to index
    %c0_151 = arith.constant 0 : index
    %c0_152 = arith.constant 0 : index
    %395 = vector.load %arg14[%394, %c0_151, %c0_152] : memref<8x8x128xf32, #tpu.memory_space<vmem>>, vector<1x8x128xf32>
    %396 = vector.shape_cast %395 : vector<1x8x128xf32> to vector<8x128xf32>
    %c0_153 = arith.constant 0 : index
    %c0_154 = arith.constant 0 : index
    %397 = vector.load %arg7[%c0_153, %c0_154] : memref<32x128xf32, #tpu.memory_space<vmem>>, vector<32x128xf32>
    %cst_155 = arith.constant dense<0.000000e+00> : vector<8x128xf32>
    %398 = tpu.matmul %393, %397, %cst_155 {dimension_numbers = #tpu.dot_dimension_numbers<[1], [0], [0], [1], [0, 0, 1, 1], [], []>} : vector<8x32xf32>, vector<32x128xf32>, vector<8x128xf32> -> vector<8x128xf32>
    %399 = arith.addf %396, %398 : vector<8x128xf32>
    %400 = vector.extract_strided_slice %399 {offsets = [0, 0], sizes = [8, 96], strides = [1, 1]} : vector<8x128xf32> to vector<8x96xf32>
    %401 = arith.negf %400 : vector<8x96xf32>
    %402 = math.exp %401 : vector<8x96xf32>
    %cst_156 = arith.constant 1.000000e+00 : f32
    %403 = vector.broadcast %cst_156 : f32 to vector<8x96xf32>
    %404 = arith.addf %403, %402 : vector<8x96xf32>
    %405 = arith.divf %403, %404 : vector<8x96xf32>
    %406 = vector.extract_strided_slice %405 {offsets = [0, 0], sizes = [8, 32], strides = [1, 1]} : vector<8x96xf32> to vector<8x32xf32>
    %407 = vector.extract_strided_slice %405 {offsets = [0, 32], sizes = [8, 32], strides = [1, 1]} : vector<8x96xf32> to vector<8x32xf32>
    %408 = vector.extract_strided_slice %405 {offsets = [0, 64], sizes = [8, 32], strides = [1, 1]} : vector<8x96xf32> to vector<8x32xf32>
    %409 = vector.extract_strided_slice %399 {offsets = [0, 96], sizes = [8, 32], strides = [1, 1]} : vector<8x128xf32> to vector<8x32xf32>
    %410 = math.tanh %409 : vector<8x32xf32>
    %411 = arith.mulf %407, %391 : vector<8x32xf32>
    %412 = arith.mulf %406, %410 : vector<8x32xf32>
    %413 = arith.addf %411, %412 : vector<8x32xf32>
    %414 = math.tanh %413 : vector<8x32xf32>
    %415 = arith.mulf %408, %414 : vector<8x32xf32>
    %c8_i32_157 = arith.constant 8 : i32
    %c1_158 = arith.constant 1 : index
    %c0_159 = arith.constant 0 : index
    %c0_160 = arith.constant 0 : index
    %416 = vector.load %arg12[%c1_158, %c0_159, %c0_160] : memref<2x8x32xf32, #tpu.memory_space<vmem>>, vector<1x8x32xf32>
    %417 = vector.shape_cast %416 : vector<1x8x32xf32> to vector<8x32xf32>
    %418 = vector.shape_cast %415 : vector<8x32xf32> to vector<1x8x32xf32>
    tpu.vector_store %arg12[%c1_158, %c0_159, %c0_160], %418 {strides = array<i32>} : memref<2x8x32xf32, #tpu.memory_space<vmem>>, vector<1x8x32xf32>,
    %c1_161 = arith.constant 1 : index
    %c0_162 = arith.constant 0 : index
    %c0_163 = arith.constant 0 : index
    %419 = vector.load %arg13[%c1_161, %c0_162, %c0_163] : memref<2x8x32xf32, #tpu.memory_space<vmem>>, vector<1x8x32xf32>
    %420 = vector.shape_cast %419 : vector<1x8x32xf32> to vector<8x32xf32>
    %421 = vector.shape_cast %413 : vector<8x32xf32> to vector<1x8x32xf32>
    tpu.vector_store %arg13[%c1_161, %c0_162, %c0_163], %421 {strides = array<i32>} : memref<2x8x32xf32, #tpu.memory_space<vmem>>, vector<1x8x32xf32>,
    %c0_164 = arith.constant 0 : index
    %c0_165 = arith.constant 0 : index
    %422 = vector.load %arg9[%c0_164, %c0_165] : memref<32x128xf32, #tpu.memory_space<vmem>>, vector<32x128xf32>
    %cst_166 = arith.constant dense<0.000000e+00> : vector<8x128xf32>
    %423 = tpu.matmul %415, %422, %cst_166 {dimension_numbers = #tpu.dot_dimension_numbers<[1], [0], [0], [1], [0, 0, 1, 1], [], []>} : vector<8x32xf32>, vector<32x128xf32>, vector<8x128xf32> -> vector<8x128xf32>
    %c0_167 = arith.constant 0 : index
    %c0_168 = arith.constant 0 : index
    %424 = vector.load %arg10[%c0_167, %c0_168] : memref<1x128xf32, #tpu.memory_space<vmem>>, vector<1x128xf32>
    %425 = vector.broadcast %424 : vector<1x128xf32> to vector<8x128xf32>
    %426 = arith.addf %423, %425 : vector<8x128xf32>
    %427 = arith.negf %426 : vector<8x128xf32>
    %428 = math.exp %427 : vector<8x128xf32>
    %cst_169 = arith.constant 1.000000e+00 : f32
    %429 = vector.broadcast %cst_169 : f32 to vector<8x128xf32>
    %430 = arith.addf %429, %428 : vector<8x128xf32>
    %431 = arith.divf %429, %430 : vector<8x128xf32>
    %c0_170 = arith.constant 0 : index
    %c0_171 = arith.constant 0 : index
    %432 = vector.load %arg11[%c0_170, %c0_171] : memref<8x128xf32, #tpu.memory_space<vmem>>, vector<8x128xf32>
    tpu.vector_store %arg11[%c0_170, %c0_171], %431 {strides = array<i32>} : memref<8x128xf32, #tpu.memory_space<vmem>>, vector<8x128xf32>,
    return
  }
}

</mosaic_0001>

<bundles_post_ra>
// kernel: tpu_custom_call.1
= control target key start
LH: loop header
LB: loop body
LE: loop exit
PB: predicated region body
PF: predicated region fallthrough
CT: control target
= control target key end

     0   :  { %19 = vsyncpa [#allocation5], 0  ;;  %s3749_s0 = inlined_call_operand.hbm [shape: f32[8,8,32], index: 0, kind: input, shape index: {}]   ;;  %s3750_s1 = inlined_call_operand.hbm [shape: f32[2,8,32], index: 1, kind: input, shape index: {}]   ;;  %s3751_s2 = inlined_call_operand.hbm [shape: f32[2,8,32], index: 2, kind: input, shape index: {}]   ;;  %s3752_s3 = inlined_call_operand.hbm [shape: f32[32,128], index: 3, kind: input, shape index: {}]   ;;  %s3753_s4 = inlined_call_operand.hbm [shape: f32[32,128], index: 4, kind: input, shape index: {}]   ;;  %s3754_s5 = inlined_call_operand.vmem [shape: f32[1,128], index: 5, kind: input, shape index: {}]   ;;  %s3755_s6 = inlined_call_operand.hbm [shape: f32[32,128], index: 6, kind: input, shape index: {}]   ;;  %s3756_s7 = inlined_call_operand.hbm [shape: f32[32,128], index: 7, kind: input, shape index: {}]   ;;  %s3757_s8 = inlined_call_operand.vmem [shape: f32[1,128], index: 8, kind: input, shape index: {}]   ;;  %s3758_s9 = inlined_call_operand.vmem [shape: f32[32,128], index: 9, kind: input, shape index: {}]   ;;  %s3759_s10 = inlined_call_operand.vmem [shape: f32[1,128], index: 10, kind: input, shape index: {}]   ;;  %s3760_s11 = inlined_call_operand.hbm [shape: f32[8,128], index: 11, kind: output, shape index: {0}]   ;;  %s3761_s12 = inlined_call_operand.hbm [shape: f32[2,8,32], index: 12, kind: output, shape index: {1}]   ;;  %s3762_s13 = inlined_call_operand.hbm [shape: f32[2,8,32], index: 13, kind: output, shape index: {2}]  }
   0x1   :  { %20 = vsyncpa [#allocation8], 0 }
   0x2   :  { %21 = vsyncpa [#allocation11], 0 }
   0x3   :  { %22 = vsyncpa [#allocation14], 0 }
   0x4   :  { %23 = vsyncpa [#allocation6], 0 }
   0x5   :  { %24 = vsyncpa [#allocation18], 0  ;;  %s3192_s25 = smov [#allocation7]   ;;  %s3193_s27 = smov [#allocation10]  }
   0x6   :  { %s42_s26 = sshll.u32 %s3192_s25, 4  ;;  %s66_s28 = sshll.u32 %s3193_s27, 4  ;;  %s43_s26 = int_to_ptr.vmem [resolvable:$true] %s42_s26  ;;  %s3280_s28 = int_to_ptr.vmem [resolvable:$true] %s66_s28 }
   0x7   :  { %s2960_s14 = scalar_lea.hbm %s3750_s1, 256 }
   0x8   :  { %p2961_p0 = scmp.ne.s32.totalorder %s3750_s1, %s2960_s14  ;;  %p2964_p1 = scmp.lt.u32.totalorder %s2960_s14, %s3750_s1 }
   0xa   :  { %p2966_p2 = pnand %p2964_p1, %p2961_p0 }
   0xc   :  { %2969 = shalt.err (!%p2966_p2)
}
   0xd   :  { %s2970_s19 = scalar_lea.vmem %s43_s26, 256  ;;  %p2975_p4 = scmp.lt.s32.totalorder %s43_s26, %s43_s26 }
   0xe   :  { %p2971_p3 = scmp.ne.s32.totalorder %s43_s26, %s2970_s19  ;;  %p2976_p5 = scmp.lt.s32.totalorder %s2970_s19, %s2970_s19 }
  0x10   :  { %p2977_p6 = por %p2976_p5, %p2975_p4 }
  0x12   :  { %p2978_p7 = pnand %p2977_p6, %p2971_p3 }
  0x14   :  { %2981 = shalt.err (!%p2978_p7)
}
  0x15   :  { %s3194_s20 = smov 128   ;;  %s3195_s21 = smov 8  }
  0x16   :  { %48 = dma.hbm_to_vmem [thread:$0]  %s3750_s1, 256, %s43_s26, [#allocation8], %s3194_s20, %s3194_s20, %s3195_s21  }
  0x17   :  { %s2982_s27 = scalar_lea.hbm %s3752_s3, 512 }
  0x18   :  { %p2983_p8 = scmp.ne.s32.totalorder %s3752_s3, %s2982_s27  ;;  %p2986_p9 = scmp.lt.u32.totalorder %s2982_s27, %s3752_s3 }
  0x1a   :  { %p2988_p10 = pnand %p2986_p9, %p2983_p8 }
  0x1c   :  { %2991 = shalt.err (!%p2988_p10)
}
  0x1d   :  { %s2992_s16 = scalar_lea.vmem %s3280_s28, 512  ;;  %p2997_p12 = scmp.lt.s32.totalorder %s3280_s28, %s3280_s28 }
  0x1e   :  { %p2993_p11 = scmp.ne.s32.totalorder %s3280_s28, %s2992_s16  ;;  %p2998_p13 = scmp.lt.s32.totalorder %s2992_s16, %s2992_s16 }
  0x20   :  { %p2999_p0 = por %p2998_p13, %p2997_p12 }
  0x22   :  { %p3000_p1 = pnand %p2999_p0, %p2993_p11 }
  0x24   :  { %3003 = shalt.err (!%p3000_p1)
}
  0x25   :  { %72 = dma.hbm_to_vmem [thread:$0]  %s3752_s3, 512, %s3280_s28, [#allocation11], %s3194_s20, %s3194_s20, %s3195_s21  }
  0x26   :  { %s3196_s17 = smov [#allocation13]   ;;  %s3197_s19 = smov [#allocation4]  }
  0x27   :  { %s92_s18 = sshll.u32 %s3196_s17, 4  ;;  %s30_s22 = sshll.u32 %s3197_s19, 4  ;;  %s93_s18 = int_to_ptr.vmem [resolvable:$true] %s92_s18  ;;  %s3317_s22 = int_to_ptr.vmem [resolvable:$true] %s30_s22 }
  0x28   :  { %s3004_s25 = scalar_lea.hbm %s3755_s6, 512 }
  0x29   :  { %p3005_p2 = scmp.ne.s32.totalorder %s3755_s6, %s3004_s25  ;;  %p3008_p3 = scmp.lt.u32.totalorder %s3004_s25, %s3755_s6 }
  0x2b   :  { %p3010_p4 = pnand %p3008_p3, %p3005_p2 }
  0x2d   :  { %3013 = shalt.err (!%p3010_p4)
}
  0x2e   :  { %s3014_s3 = scalar_lea.vmem %s93_s18, 512  ;;  %p3019_p6 = scmp.lt.s32.totalorder %s93_s18, %s93_s18 }
  0x2f   :  { %p3015_p5 = scmp.ne.s32.totalorder %s93_s18, %s3014_s3  ;;  %p3020_p7 = scmp.lt.s32.totalorder %s3014_s3, %s3014_s3 }
  0x31   :  { %p3021_p8 = por %p3020_p7, %p3019_p6 }
  0x33   :  { %p3022_p9 = pnand %p3021_p8, %p3015_p5 }
  0x35   :  { %3025 = shalt.err (!%p3022_p9)
}
  0x36   :  { %98 = dma.hbm_to_vmem [thread:$0]  %s3755_s6, 512, %s93_s18, [#allocation14], %s3194_s20, %s3194_s20, %s3195_s21  }
  0x37   :  { %s3026_s26 = scalar_lea.hbm %s3749_s0, 1024 }
  0x38   :  { %p3027_p10 = scmp.ne.s32.totalorder %s3749_s0, %s3026_s26  ;;  %p3030_p11 = scmp.lt.u32.totalorder %s3026_s26, %s3749_s0 }
  0x3a   :  { %p3032_p12 = pnand %p3030_p11, %p3027_p10 }
  0x3c   :  { %3035 = shalt.err (!%p3032_p12)
}
  0x3d   :  { %s3036_s25 = scalar_lea.vmem %s3317_s22, 1024  ;;  %p3041_p0 = scmp.lt.s32.totalorder %s3317_s22, %s3317_s22 }
  0x3e   :  { %p3037_p13 = scmp.ne.s32.totalorder %s3317_s22, %s3036_s25  ;;  %p3042_p1 = scmp.lt.s32.totalorder %s3036_s25, %s3036_s25 }
  0x40   :  { %p3043_p2 = por %p3042_p1, %p3041_p0 }
  0x42   :  { %p3044_p3 = pnand %p3043_p2, %p3037_p13 }
  0x44   :  { %3047 = shalt.err (!%p3044_p3)
}
  0x45   :  { %36 = dma.hbm_to_vmem [thread:$0]  %s3749_s0, 1024, %s3317_s22, [#allocation5], %s3194_s20, %s3194_s20, %s3195_s21  }
  0x46   :  { %s3198_s27 = smov [#allocation9]   ;;  %s3199_s30 = smov [#allocation12]  }
  0x47   :  { %s54_s29 = sshll.u32 %s3198_s27, 4  ;;  %s78_s14 = sshll.u32 %s3199_s30, 4  ;;  %s55_s29 = int_to_ptr.vmem [resolvable:$true] %s54_s29  ;;  %s3354_s14 = int_to_ptr.vmem [resolvable:$true] %s78_s14 }
  0x48   :  { %s3048_s15 = scalar_lea.hbm %s3751_s2, 256 }
  0x49   :  { %p3049_p4 = scmp.ne.s32.totalorder %s3751_s2, %s3048_s15  ;;  %p3052_p5 = scmp.lt.u32.totalorder %s3048_s15, %s3751_s2 }
  0x4b   :  { %p3054_p6 = pnand %p3052_p5, %p3049_p4 }
  0x4d   :  { %3057 = shalt.err (!%p3054_p6)
}
  0x4e   :  { %s3058_s0 = scalar_lea.vmem %s55_s29, 256  ;;  %p3063_p8 = scmp.lt.s32.totalorder %s55_s29, %s55_s29 }
  0x4f   :  { %p3059_p7 = scmp.ne.s32.totalorder %s55_s29, %s3058_s0  ;;  %p3064_p9 = scmp.lt.s32.totalorder %s3058_s0, %s3058_s0 }
  0x51   :  { %p3065_p10 = por %p3064_p9, %p3063_p8 }
  0x53   :  { %p3066_p11 = pnand %p3065_p10, %p3059_p7 }
  0x55   :  { %3069 = shalt.err (!%p3066_p11)
}
  0x56   :  { %60 = dma.hbm_to_vmem [thread:$0]  %s3751_s2, 256, %s55_s29, [#allocation8], %s3194_s20, %s3194_s20, %s3195_s21  }
  0x57   :  { %s3070_s25 = scalar_lea.hbm %s3753_s4, 512 }
  0x58   :  { %p3071_p12 = scmp.ne.s32.totalorder %s3753_s4, %s3070_s25  ;;  %p3074_p13 = scmp.lt.u32.totalorder %s3070_s25, %s3753_s4 }
  0x5a   :  { %p3076_p0 = pnand %p3074_p13, %p3071_p12 }
  0x5c   :  { %3079 = shalt.err (!%p3076_p0)
}
  0x5d   :  { %s3080_s3 = scalar_lea.vmem %s3354_s14, 512  ;;  %p3085_p2 = scmp.lt.s32.totalorder %s3354_s14, %s3354_s14 }
  0x5e   :  { %p3081_p1 = scmp.ne.s32.totalorder %s3354_s14, %s3080_s3  ;;  %p3086_p3 = scmp.lt.s32.totalorder %s3080_s3, %s3080_s3 }
  0x60   :  { %p3087_p4 = por %p3086_p3, %p3085_p2 }
  0x62   :  { %p3088_p5 = pnand %p3087_p4, %p3081_p1 }
  0x64   :  { %3091 = shalt.err (!%p3088_p5)
}
  0x65   :  { %84 = dma.hbm_to_vmem [thread:$0]  %s3753_s4, 512, %s3354_s14, [#allocation11], %s3194_s20, %s3194_s20, %s3195_s21  }
  0x66   :  { %s3200_s28 = smov [#allocation15]   ;;  %s3092_s26 = scalar_lea.hbm %s3756_s7, 512 }
  0x67   :  { %s104_s15 = sshll.u32 %s3200_s28, 4  ;;  %p3093_p6 = scmp.ne.s32.totalorder %s3756_s7, %s3092_s26  ;;  %s105_s15 = int_to_ptr.vmem [resolvable:$true] %s104_s15 }
  0x68   :  { %p3096_p7 = scmp.lt.u32.totalorder %s3092_s26, %s3756_s7 }
  0x6a   :  { %p3098_p8 = pnand %p3096_p7, %p3093_p6 }
  0x6c   :  { %3101 = shalt.err (!%p3098_p8)
}
  0x6d   :  { %s3102_s23 = scalar_lea.vmem %s105_s15, 512  ;;  %p3107_p10 = scmp.lt.s32.totalorder %s105_s15, %s105_s15 }
  0x6e   :  { %p3103_p9 = scmp.ne.s32.totalorder %s105_s15, %s3102_s23  ;;  %p3108_p11 = scmp.lt.s32.totalorder %s3102_s23, %s3102_s23 }
  0x70   :  { %p3109_p12 = por %p3108_p11, %p3107_p10 }
  0x72   :  { %p3110_p13 = pnand %p3109_p12, %p3103_p9 }
  0x74   :  { %3113 = shalt.err (!%p3110_p13)
}
  0x75   :  { %110 = dma.hbm_to_vmem [thread:$0]  %s3756_s7, 512, %s105_s15, [#allocation14], %s3194_s20, %s3194_s20, %s3195_s21  }
  0x76   :  { %3180 = dma.done.wait [#allocation5], 1024  }
  0x77   :  { %3181 = vsyncadd [#allocation5], 4294966272 }
  0x78   :  { %3182 = dma.done.wait [#allocation8], 512  }
  0x79   :  { %3183 = vsyncadd [#allocation8], 4294966784 }
  0x7a   :  { %3184 = dma.done.wait [#allocation11], 1024  }
  0x7b   :  { %3185 = vsyncadd [#allocation11], 4294966272 }
  0x7c   :  { %3186 = dma.done.wait [#allocation14], 1024  }
  0x7d   :  { %3187 = vsyncadd [#allocation14], 4294966272  ;;  %v3201_v0 = vmov 0.0|0.0   ;;  %vm3202_vm0 = vmmov 0   ;;  %v3203_v1 = vmov 0.0   ;;  %v146_v2 = vld [vmem:[#allocation10] sm:$0xff] }
  0x7e   :  { %2700 = vmatprep.subr.bf16.mxu1 %v3201_v0  ;;  %2493 = vmatprep.mubr.msk.f32.mxu1 %vm3202_vm0, %v3203_v1  ;;  %v147_v3 = vld [vmem:[#allocation10 + $0x8] sm:$0xff]  ;;  %v298_v4 = vld [vmem:[#allocation12] sm:$0xff]  ;;  %vm157_vm1 = vcmask 261120   ;;  %v148_v7 = vld [vmem:[#allocation10 + $0x10] sm:$0xff]  ;;  %s3204_s25 = smov 32   ;;  %s3206_s16 = smov 96  }
  0x7f   :  { %v2692_v5 = vpack.c.bf16 %v147_v3, %v146_v2  ;;  %v299_v6 = vld [vmem:[#allocation12 + $0x8] sm:$0xff]  ;;  %v149_v8 = vld [vmem:[#allocation10 + $0x18] sm:$0xff]  ;;  %v138_v11 = vld [vmem:[#allocation4] sm:$0xff] }
  0x80   :  { %v3409_v9 = vpack.c.bf16 %v299_v6, %v298_v4  ;;  %v2696_v10 = vpack.c.bf16 %v149_v8, %v148_v7  ;;  %v300_v12 = vld [vmem:[#allocation12 + $0x10] sm:$0xff]  ;;  %v301_v13 = vld [vmem:[#allocation12 + $0x18] sm:$0xff]  ;;  %2473 = vmatprep.mubr.msk.f32.mxu0 %vm157_vm1, %v138_v11  ;;  %v139_v15 = vld [vmem:[#allocation4 + $0x8] sm:$0xff] }
  0x81   :  { %2693 = vmatprep.subr.bf16.mxu0 %v2692_v5  ;;  %v3413_v14 = vpack.c.bf16 %v301_v13, %v300_v12  ;;  %v295_v16 = vld [vmem:[#allocation7] sm:$0xff]  ;;  %v296_v25 = vld [vmem:[#allocation9] sm:$0xff]  ;;  %v141_v55 = vld [vmem:[#allocation4 + $0x18] sm:$0xff] }
  0x82   :  { %2695 = vmatpush3.bf16.msra.mxu0 %v2692_v5  ;;  %2702 = vmatpush3.bf16.msra.mxu1 %v3409_v9  ;;  %v3434_v17 = vld [vmem:[%s3754_s5] ss:$0 sm:$0xff]  ;;  %s3205_s5 = smov 64   ;;  %v140_v54 = vld [vmem:[#allocation4 + $0x10] sm:$0xff]  ;;  %v143_v57 = vld [vmem:[#allocation4 + $0x28] sm:$0xff] }
  0x83   :  { %2697 = vmatprep.subr.bf16.mxu0 %v2696_v10  ;;  %2703 = vmatprep.subr.bf16.mxu1 %v3201_v0  ;;  %v142_v56 = vld [vmem:[#allocation4 + $0x20] sm:$0xff]  ;;  %v144_v58 = vld [vmem:[#allocation4 + $0x30] sm:$0xff]  ;;  %v145_v59 = vld [vmem:[#allocation4 + $0x38] sm:$0xff] }
  0x86   :  { %2699 = vmatpush3.bf16.msra.mxu0 %v2696_v10  ;;  %2705 = vmatpush3.bf16.msra.mxu1 %v3413_v14 }
  0x87   :  { %2706 = vmatprep.subr.bf16.mxu1 %v3201_v0  ;;  %2712 = vmatprep.subr.bf16.mxu0 %v3201_v0 }
  0x89   :  { %2474 = vmatmul.mubr.msk.f32.vlgmr.msra.gmra.mrb[0].mxu0 %vm157_vm1, %v139_v15  ;;  %2494 = vmatmul.mubr.msk.f32.vlgmr.msra.gmra.mrb[0].mxu1 %vm157_vm1, %v295_v16 }
  0x8a   :  { %2708 = vmatpush3.bf16.msra.mxu1 %v3409_v9  ;;  %2504 = vmatprep.mubr.msk.f32.mxu1 %vm3202_vm0, %v3203_v1 }
  0x8b   :  { %2709 = vmatprep.subr.bf16.mxu1 %v3201_v0  ;;  %2714 = vmatpush3.bf16.msra.mxu0 %v3409_v9 }
  0x8c   :  { %2715 = vmatprep.subr.bf16.mxu0 %v3201_v0  ;;  %2476 = vmatprep.mubr.msk.f32.mxu0 %vm157_vm1, %v140_v54 }
  0x8d   :  { %2477 = vmatmul.mubr.msk.f32.gmra.mrb[2].mxu0 %vm157_vm1, %v141_v55 }
  0x8e   :  { %2711 = vmatpush3.bf16.msra.mxu1 %v3413_v14  ;;  %2479 = vmatprep.mubr.msk.f32.mxu0 %vm157_vm1, %v142_v56 }
  0x8f   :  { %2717 = vmatpush3.bf16.msra.mxu0 %v3413_v14  ;;  %2718 = vmatprep.subr.bf16.mxu1 %v3201_v0 }
  0x90   :  { %2724 = vmatprep.subr.bf16.mxu0 %v3201_v0 }
  0x91   :  { %2480 = vmatmul.mubr.msk.f32.gmra.mrb[4].mxu0 %vm157_vm1, %v143_v57 }
  0x92   :  { %2482 = vmatprep.mubr.msk.f32.mxu0 %vm157_vm1, %v144_v58 }
  0x95   :  { %2483 = vmatmul.mubr.msk.f32.gmra.mrb[6].mxu0 %vm157_vm1, %v145_v59 }
  0x96   :  { %2515 = vmatprep.mubr.msk.f32.mxu0 %vm3202_vm0, %v3203_v1 }
 0x15c   :  { %v2475_v18 = vpop.f32.mrb[0].mxu0  ;;  %v371_v19 = vpop.f32.mrb[0].mxu1 }
 0x15d   :  { %v248_v20 = vpop.f32.mrb[1].mxu0  ;;  %v2495_v21 = vpop.f32.mrb[1].mxu1  ;;  %v254_v40 = vadd.f32 %v2475_v18, %v3434_v17 }
 0x15e   :  { %v249_v22 = vadd.f32 %v3434_v17, %v248_v20 }
 0x160   :  { %v375_v23 = vadd.f32 %v371_v19, %v249_v22  ;;  %v2478_v63 = vpop.f32.mrb[2].mxu0 }
 0x161   :  { %v258_v2 = vpop.f32.mrb[3].mxu0 }
 0x162   :  { %2828 = vtanh.f32 %v375_v23  ;;  %v2313_v26 = vmul.f32 -1.442695, %v375_v23  ;;  %v259_v8 = vadd.f32 %v3434_v17, %v258_v2 }
 0x164   :  { %2830 = vpow2.f32 %v2313_v26  ;;  %v3463_v3 = vpop.f32.mrb[4].mxu0 }
 0x165   :  { %v3465_v4 = vpop.f32.mrb[5].mxu0 }
 0x168   :  { %v3467_v5 = vpop.f32.mrb[6].mxu0 }
 0x169   :  { %v3469_v6 = vpop.f32.mrb[7].mxu0 }
 0x16c   :  { %v2829_v24 = vpop.eup %2828 }
 0x16d   :  { %389 = vrot.lane.b32.xlu0 %v2829_v24, %s3204_s25 }
 0x16e   :  { %v2831_v27 = vpop.eup %2830 }
 0x16f   :  { %v379_v28 = vadd.f32 1.0, %v2831_v27 }
 0x171   :  { %384 = vrot.lane.b32.xlu0 %v296_v25, %s3204_s25  ;;  %2832 = vrcp.f32 %v379_v28 }
 0x17b   :  { %v2833_v29 = vpop.eup %2832 }
 0x1df   :  { %v390_v30 = vpop.permute.xlu0 %389 }
 0x1e0   :  { %v392_v31 = vmul.f32 %v2833_v29, %v390_v30 }
 0x1e2   :  { %394 = vrot.lane.b32.xlu1 %v392_v31, %s3204_s25 }
 0x1e3   :  { %v385_v32 = vpop.permute.xlu0 %384 }
 0x1e4   :  { %v387_v33 = vmul.f32 %v2833_v29, %v385_v32 }
 0x254   :  { %v395_v34 = vpop.permute.xlu1 %394 }
 0x255   :  { %v397_v35 = vadd.f32 %v395_v34, %v387_v33 }
 0x257   :  { %2834 = vtanh.f32 %v397_v35 }
 0x261   :  { %v2835_v36 = vpop.eup %2834 }
 0x262   :  { %400 = vrot.lane.b32.xlu1 %v2835_v36, %s3204_s25 }
 0x2d4   :  { %v401_v37 = vpop.permute.xlu1 %400 }
 0x2d5   :  { %v403_v38 = vmul.f32 %v2833_v29, %v401_v37  ;;  %v264_v29 = vadd.f32 %v2478_v63, %v3434_v17 }
 0x2d7   :  { %405 = vrot.lane.b32.xlu0 %v403_v38, %s3205_s5 }
 0x349   :  { %v406_v39 = vpop.permute.xlu0 %405 }
 0x34a   :  { %408 = vst.msk [vmem:[#allocation3] sm:$0xff] %vm157_vm1, %v406_v39  ;;  %2505 = vmatmul.mubr.msk.f32.vlgmr.msra.gmra.mrb[2].mxu1 %vm157_vm1, %v406_v39 }
 0x34b   :  { %2720 = vmatpush3.bf16.msra.mxu1 %v3409_v9  ;;  %2526 = vmatprep.mubr.msk.f32.mxu1 %vm3202_vm0, %v3203_v1 }
 0x34c   :  { %2721 = vmatprep.subr.bf16.mxu1 %v3201_v0 }
 0x34f   :  { %2723 = vmatpush3.bf16.msra.mxu1 %v3413_v14 }
 0x350   :  { %2730 = vmatprep.subr.bf16.mxu1 %v3201_v0 }
 0x41d   :  { %v483_v41 = vpop.f32.mrb[2].mxu1 }
 0x41e   :  { %v487_v42 = vadd.f32 %v483_v41, %v254_v40  ;;  %v2506_v43 = vpop.f32.mrb[3].mxu1 }
 0x420   :  { %2836 = vtanh.f32 %v487_v42  ;;  %v2315_v45 = vmul.f32 -1.442695, %v487_v42 }
 0x422   :  { %2838 = vpow2.f32 %v2315_v45 }
 0x42a   :  { %v2837_v44 = vpop.eup %2836 }
 0x42b   :  { %497 = vrot.lane.b32.xlu1 %v2837_v44, %s3204_s25 }
 0x42c   :  { %v2839_v46 = vpop.eup %2838 }
 0x42d   :  { %v491_v47 = vadd.f32 1.0, %v2839_v46 }
 0x42f   :  { %2840 = vrcp.f32 %v491_v47  ;;  %v269_v47 = vadd.f32 %v3434_v17, %v3465_v4  ;;  %v274_v4 = vadd.f32 %v3463_v3, %v3434_v17 }
 0x439   :  { %v2841_v48 = vpop.eup %2840 }
 0x43a   :  { %v495_v51 = vmul.f32 %v2841_v48, %v397_v35 }
 0x49d   :  { %v498_v49 = vpop.permute.xlu1 %497 }
 0x49e   :  { %v500_v50 = vmul.f32 %v2841_v48, %v498_v49 }
 0x4a0   :  { %502 = vrot.lane.b32.xlu0 %v500_v50, %s3204_s25 }
 0x512   :  { %v503_v52 = vpop.permute.xlu0 %502 }
 0x513   :  { %v505_v53 = vadd.f32 %v503_v52, %v495_v51 }
 0x515   :  { %2842 = vtanh.f32 %v505_v53 }
 0x51f   :  { %v2843_v60 = vpop.eup %2842 }
 0x520   :  { %508 = vrot.lane.b32.xlu1 %v2843_v60, %s3204_s25 }
 0x592   :  { %v509_v61 = vpop.permute.xlu1 %508 }
 0x593   :  { %v511_v62 = vmul.f32 %v2841_v48, %v509_v61 }
 0x595   :  { %513 = vrot.lane.b32.xlu0 %v511_v62, %s3205_s5 }
 0x607   :  { %v514_v7 = vpop.permute.xlu0 %513 }
 0x608   :  { %517 = vst.msk [vmem:[#allocation3 + $0x8] sm:$0xff] %vm157_vm1, %v514_v7  ;;  %2516 = vmatmul.mubr.msk.f32.vlgmr.msra.gmra.mrb[8].mxu0 %vm157_vm1, %v514_v7 }
 0x609   :  { %2726 = vmatpush3.bf16.msra.mxu0 %v3409_v9  ;;  %2537 = vmatprep.mubr.msk.f32.mxu0 %vm3202_vm0, %v3203_v1 }
 0x60a   :  { %2727 = vmatprep.subr.bf16.mxu0 %v3201_v0 }
 0x60d   :  { %2729 = vmatpush3.bf16.msra.mxu0 %v3413_v14 }
 0x60e   :  { %2736 = vmatprep.subr.bf16.mxu0 %v3201_v0 }
 0x6db   :  { %v592_v10 = vpop.f32.mrb[8].mxu0 }
 0x6dc   :  { %v596_v11 = vadd.f32 %v592_v10, %v259_v8  ;;  %v2517_v12 = vpop.f32.mrb[9].mxu0 }
 0x6de   :  { %2844 = vtanh.f32 %v596_v11  ;;  %v2317_v15 = vmul.f32 -1.442695, %v596_v11 }
 0x6e0   :  { %2846 = vpow2.f32 %v2317_v15 }
 0x6e8   :  { %v2845_v13 = vpop.eup %2844 }
 0x6e9   :  { %606 = vrot.lane.b32.xlu1 %v2845_v13, %s3204_s25 }
 0x6ea   :  { %v2847_v16 = vpop.eup %2846 }
 0x6eb   :  { %v600_v18 = vadd.f32 1.0, %v2847_v16 }
 0x6ed   :  { %2848 = vrcp.f32 %v600_v18 }
 0x6f7   :  { %v2849_v19 = vpop.eup %2848 }
 0x6f8   :  { %v604_v22 = vmul.f32 %v2849_v19, %v505_v53 }
 0x75b   :  { %v607_v20 = vpop.permute.xlu1 %606 }
 0x75c   :  { %v609_v21 = vmul.f32 %v2849_v19, %v607_v20  ;;  %v1186_v20 = vld [vmem:[#allocation13] sm:$0xff] }
 0x75e   :  { %611 = vrot.lane.b32.xlu0 %v609_v21, %s3204_s25  ;;  %v1187_v21 = vld [vmem:[#allocation13 + $0x8] sm:$0xff] }
 0x7d0   :  { %v612_v23 = vpop.permute.xlu0 %611 }
 0x7d1   :  { %v614_v24 = vadd.f32 %v612_v23, %v604_v22  ;;  %v2748_v22 = vpack.c.bf16 %v1187_v21, %v1186_v20 }
 0x7d3   :  { %2850 = vtanh.f32 %v614_v24 }
 0x7dd   :  { %v2851_v25 = vpop.eup %2850 }
 0x7de   :  { %617 = vrot.lane.b32.xlu1 %v2851_v25, %s3204_s25 }
 0x850   :  { %v618_v26 = vpop.permute.xlu1 %617 }
 0x851   :  { %v620_v27 = vmul.f32 %v2849_v19, %v618_v26  ;;  %v1188_v26 = vld [vmem:[#allocation13 + $0x10] sm:$0xff] }
 0x853   :  { %622 = vrot.lane.b32.xlu0 %v620_v27, %s3205_s5  ;;  %v1189_v27 = vld [vmem:[#allocation13 + $0x18] sm:$0xff] }
 0x8c5   :  { %v623_v28 = vpop.permute.xlu0 %622 }
 0x8c6   :  { %626 = vst.msk [vmem:[#allocation3 + $0x10] sm:$0xff] %vm157_vm1, %v623_v28  ;;  %2527 = vmatmul.mubr.msk.f32.vlgmr.msra.gmra.mrb[4].mxu1 %vm157_vm1, %v623_v28  ;;  %v2752_v28 = vpack.c.bf16 %v1189_v27, %v1188_v26 }
 0x8c7   :  { %2732 = vmatpush3.bf16.msra.mxu1 %v3409_v9  ;;  %2548 = vmatprep.mubr.msk.f32.mxu1 %vm3202_vm0, %v3203_v1 }
 0x8c8   :  { %2733 = vmatprep.subr.bf16.mxu1 %v3201_v0 }
 0x8cb   :  { %2735 = vmatpush3.bf16.msra.mxu1 %v3413_v14 }
 0x8cc   :  { %2742 = vmatprep.subr.bf16.mxu1 %v3201_v0 }
 0x999   :  { %v701_v30 = vpop.f32.mrb[4].mxu1 }
 0x99a   :  { %v705_v31 = vadd.f32 %v701_v30, %v264_v29  ;;  %v2528_v32 = vpop.f32.mrb[5].mxu1  ;;  %v1178_v30 = vld [vmem:[#allocation3] sm:$0xff] }
 0x99b   :  { %v1180_v32 = vld [vmem:[#allocation3 + $0x10] sm:$0xff] }
 0x99c   :  { %2852 = vtanh.f32 %v705_v31  ;;  %v2319_v34 = vmul.f32 -1.442695, %v705_v31  ;;  %v1179_v31 = vld [vmem:[#allocation3 + $0x8] sm:$0xff] }
 0x99e   :  { %2854 = vpow2.f32 %v2319_v34 }
 0x9a6   :  { %v2853_v33 = vpop.eup %2852 }
 0x9a7   :  { %715 = vrot.lane.b32.xlu1 %v2853_v33, %s3204_s25 }
 0x9a8   :  { %v2855_v35 = vpop.eup %2854 }
 0x9a9   :  { %v709_v36 = vadd.f32 1.0, %v2855_v35 }
 0x9ab   :  { %2856 = vrcp.f32 %v709_v36  ;;  %v279_v36 = vadd.f32 %v3434_v17, %v3469_v6 }
 0x9b5   :  { %v2857_v37 = vpop.eup %2856 }
 0x9b6   :  { %v713_v40 = vmul.f32 %v2857_v37, %v614_v24 }
 0xa19   :  { %v716_v38 = vpop.permute.xlu1 %715 }
 0xa1a   :  { %v718_v39 = vmul.f32 %v2857_v37, %v716_v38 }
 0xa1c   :  { %720 = vrot.lane.b32.xlu0 %v718_v39, %s3204_s25 }
 0xa8e   :  { %v721_v41 = vpop.permute.xlu0 %720 }
 0xa8f   :  { %v723_v42 = vadd.f32 %v721_v41, %v713_v40 }
 0xa91   :  { %2858 = vtanh.f32 %v723_v42 }
 0xa9b   :  { %v2859_v43 = vpop.eup %2858 }
 0xa9c   :  { %726 = vrot.lane.b32.xlu1 %v2859_v43, %s3204_s25 }
 0xb0e   :  { %v727_v44 = vpop.permute.xlu1 %726 }
 0xb0f   :  { %v729_v45 = vmul.f32 %v2857_v37, %v727_v44 }
 0xb11   :  { %731 = vrot.lane.b32.xlu0 %v729_v45, %s3205_s5 }
 0xb83   :  { %v732_v46 = vpop.permute.xlu0 %731 }
 0xb84   :  { %735 = vst.msk [vmem:[#allocation3 + $0x18] sm:$0xff] %vm157_vm1, %v732_v46  ;;  %2538 = vmatmul.mubr.msk.f32.vlgmr.msra.gmra.mrb[10].mxu0 %vm157_vm1, %v732_v46 }
 0xb85   :  { %2738 = vmatpush3.bf16.msra.mxu0 %v3409_v9  ;;  %2559 = vmatprep.mubr.msk.f32.mxu0 %vm3202_vm0, %v3203_v1 }
 0xb86   :  { %2739 = vmatprep.subr.bf16.mxu0 %v3201_v0 }
 0xb89   :  { %2741 = vmatpush3.bf16.msra.mxu0 %v3413_v14 }
 0xb8a   :  { %2749 = vmatprep.subr.bf16.mxu0 %v2748_v22 }
 0xb8b   :  { %v1181_v33 = vld [vmem:[#allocation3 + $0x18] sm:$0xff] }
 0xc57   :  { %v810_v48 = vpop.f32.mrb[10].mxu0 }
 0xc58   :  { %v814_v49 = vadd.f32 %v810_v48, %v269_v47  ;;  %v2539_v50 = vpop.f32.mrb[11].mxu0 }
 0xc5a   :  { %2860 = vtanh.f32 %v814_v49  ;;  %v2321_v52 = vmul.f32 -1.442695, %v814_v49 }
 0xc5c   :  { %2862 = vpow2.f32 %v2321_v52 }
 0xc64   :  { %v2861_v51 = vpop.eup %2860 }
 0xc65   :  { %824 = vrot.lane.b32.xlu1 %v2861_v51, %s3204_s25 }
 0xc66   :  { %v2863_v53 = vpop.eup %2862 }
 0xc67   :  { %v818_v54 = vadd.f32 1.0, %v2863_v53 }
 0xc69   :  { %2864 = vrcp.f32 %v818_v54 }
 0xc73   :  { %v2865_v55 = vpop.eup %2864 }
 0xc74   :  { %v822_v58 = vmul.f32 %v2865_v55, %v723_v42 }
 0xcd7   :  { %v825_v56 = vpop.permute.xlu1 %824 }
 0xcd8   :  { %v827_v57 = vmul.f32 %v2865_v55, %v825_v56  ;;  %v1339_v56 = vld [vmem:[#allocation15] sm:$0xff] }
 0xcda   :  { %829 = vrot.lane.b32.xlu0 %v827_v57, %s3204_s25  ;;  %v1340_v57 = vld [vmem:[#allocation15 + $0x8] sm:$0xff] }
 0xd4c   :  { %v830_v59 = vpop.permute.xlu0 %829 }
 0xd4d   :  { %v832_v60 = vadd.f32 %v830_v59, %v822_v58  ;;  %v3551_v58 = vpack.c.bf16 %v1340_v57, %v1339_v56  ;;  %v1341_v59 = vld [vmem:[#allocation15 + $0x10] sm:$0xff] }
 0xd4f   :  { %2866 = vtanh.f32 %v832_v60 }
 0xd59   :  { %v2867_v61 = vpop.eup %2866 }
 0xd5a   :  { %835 = vrot.lane.b32.xlu1 %v2867_v61, %s3204_s25 }
 0xdcc   :  { %v836_v62 = vpop.permute.xlu1 %835 }
 0xdcd   :  { %v838_v63 = vmul.f32 %v2865_v55, %v836_v62 }
 0xdcf   :  { %840 = vrot.lane.b32.xlu0 %v838_v63, %s3205_s5 }
 0xe41   :  { %v841_v2 = vpop.permute.xlu0 %840 }
 0xe42   :  { %844 = vst.msk [vmem:[#allocation3 + $0x20] sm:$0xff] %vm157_vm1, %v841_v2  ;;  %2549 = vmatmul.mubr.msk.f32.vlgmr.msra.gmra.mrb[6].mxu1 %vm157_vm1, %v841_v2  ;;  %v1337_v2 = vld [vmem:[#allocation9 + $0x8] sm:$0xff] }
 0xe43   :  { %2744 = vmatpush3.bf16.msra.mxu1 %v3409_v9  ;;  %2570 = vmatprep.mubr.msk.f32.mxu1 %vm3202_vm0, %v3203_v1 }
 0xe44   :  { %2745 = vmatprep.subr.bf16.mxu1 %v3201_v0 }
 0xe47   :  { %2747 = vmatpush3.bf16.msra.mxu1 %v3413_v14 }
 0xe48   :  { %2756 = vmatprep.subr.bf16.mxu1 %v3201_v0 }
 0xe49   :  { %v1182_v34 = vld [vmem:[#allocation3 + $0x20] sm:$0xff] }
 0xf15   :  { %v919_v7 = vpop.f32.mrb[6].mxu1 }
 0xf16   :  { %v923_v8 = vadd.f32 %v919_v7, %v274_v4  ;;  %v2550_v10 = vpop.f32.mrb[7].mxu1  ;;  %v1335_v7 = vld [vmem:[#allocation7 + $0x8] sm:$0xff] }
 0xf17   :  { %v284_v10 = vadd.f32 %v3467_v5, %v3434_v17 }
 0xf18   :  { %2868 = vtanh.f32 %v923_v8  ;;  %v2323_v9 = vmul.f32 -1.442695, %v923_v8 }
 0xf1a   :  { %2870 = vpow2.f32 %v2323_v9 }
 0xf22   :  { %v2869_v11 = vpop.eup %2868 }
 0xf23   :  { %933 = vrot.lane.b32.xlu1 %v2869_v11, %s3204_s25 }
 0xf24   :  { %v2871_v12 = vpop.eup %2870 }
 0xf25   :  { %v927_v13 = vadd.f32 1.0, %v2871_v12 }
 0xf27   :  { %2872 = vrcp.f32 %v927_v13  ;;  %v3582_v13 = vld [vmem:[%s3757_s8] ss:$0 sm:$0xff] }
 0xf31   :  { %v2873_v15 = vpop.eup %2872 }
 0xf32   :  { %v931_v18 = vmul.f32 %v2873_v15, %v832_v60  ;;  %v1342_v60 = vld [vmem:[#allocation15 + $0x18] sm:$0xff] }
 0xf33   :  { %v3555_v61 = vpack.c.bf16 %v1342_v60, %v1341_v59 }
 0xf95   :  { %v934_v16 = vpop.permute.xlu1 %933 }
 0xf96   :  { %v936_v14 = vmul.f32 %v2873_v15, %v934_v16 }
 0xf98   :  { %938 = vrot.lane.b32.xlu0 %v936_v14, %s3204_s25 }
0x100a   :  { %v939_v19 = vpop.permute.xlu0 %938 }
0x100b   :  { %v941_v3 = vadd.f32 %v939_v19, %v931_v18 }
0x100d   :  { %2874 = vtanh.f32 %v941_v3 }
0x1017   :  { %v2875_v23 = vpop.eup %2874 }
0x1018   :  { %944 = vrot.lane.b32.xlu1 %v2875_v23, %s3204_s25 }
0x108a   :  { %v945_v24 = vpop.permute.xlu1 %944 }
0x108b   :  { %v947_v25 = vmul.f32 %v2873_v15, %v945_v24 }
0x108d   :  { %949 = vrot.lane.b32.xlu0 %v947_v25, %s3205_s5 }
0x10ff   :  { %v950_v29 = vpop.permute.xlu0 %949 }
0x1100   :  { %953 = vst.msk [vmem:[#allocation3 + $0x28] sm:$0xff] %vm157_vm1, %v950_v29  ;;  %2560 = vmatmul.mubr.msk.f32.vlgmr.msra.gmra.mrb[12].mxu0 %vm157_vm1, %v950_v29 }
0x1101   :  { %2751 = vmatpush3.bf16.msra.mxu0 %v2748_v22  ;;  %2581 = vmatprep.mubr.msk.f32.mxu0 %vm157_vm1, %v1178_v30 }
0x1102   :  { %2753 = vmatprep.subr.bf16.mxu0 %v2752_v28 }
0x1105   :  { %2755 = vmatpush3.bf16.msra.mxu0 %v2752_v28 }
0x1106   :  { %2768 = vmatprep.subr.bf16.mxu0 %v3201_v0 }
0x1107   :  { %v1183_v35 = vld [vmem:[#allocation3 + $0x28] sm:$0xff] }
0x1108   :  { %2582 = vmatmul.mubr.msk.f32.vlgmr.msra.gmra.mrb[14].mxu0 %vm157_vm1, %v1179_v31 }
0x1109   :  { %2584 = vmatprep.mubr.msk.f32.mxu0 %vm157_vm1, %v1180_v32  ;;  %2770 = vmatpush3.bf16.msra.mxu0 %v3551_v58 }
0x110a   :  { %2771 = vmatprep.subr.bf16.mxu0 %v3201_v0 }
0x110c   :  { %2585 = vmatmul.mubr.msk.f32.gmra.mrb[16].mxu0 %vm157_vm1, %v1181_v33 }
0x110d   :  { %2587 = vmatprep.mubr.msk.f32.mxu0 %vm157_vm1, %v1182_v34  ;;  %2773 = vmatpush3.bf16.msra.mxu0 %v3555_v61 }
0x110e   :  { %2780 = vmatprep.subr.bf16.mxu0 %v3201_v0 }
0x1110   :  { %2588 = vmatmul.mubr.msk.f32.gmra.mrb[18].mxu0 %vm157_vm1, %v1183_v35 }
0x11d3   :  { %v1028_v37 = vpop.f32.mrb[12].mxu0 }
0x11d4   :  { %v1032_v38 = vadd.f32 %v1028_v37, %v279_v36  ;;  %v2561_v39 = vpop.f32.mrb[13].mxu0 }
0x11d6   :  { %2876 = vtanh.f32 %v1032_v38  ;;  %v2325_v47 = vmul.f32 -1.442695, %v1032_v38 }
0x11d8   :  { %2878 = vpow2.f32 %v2325_v47 }
0x11db   :  { %v3535_v40 = vpop.f32.mrb[14].mxu0 }
0x11dc   :  { %v1287_v41 = vpop.f32.mrb[15].mxu0 }
0x11dd   :  { %v1288_v15 = vadd.f32 %v3582_v13, %v1287_v41 }
0x11df   :  { %v3537_v42 = vpop.f32.mrb[16].mxu0 }
0x11e0   :  { %v2877_v43 = vpop.eup %2876  ;;  %v3539_v44 = vpop.f32.mrb[17].mxu0 }
0x11e1   :  { %1042 = vrot.lane.b32.xlu1 %v2877_v43, %s3204_s25 }
0x11e2   :  { %v2879_v6 = vpop.eup %2878 }
0x11e3   :  { %v3542_v45 = vpop.f32.mrb[18].mxu0  ;;  %v1036_v48 = vadd.f32 1.0, %v2879_v6 }
0x11e4   :  { %v3544_v46 = vpop.f32.mrb[19].mxu0 }
0x11e5   :  { %2880 = vrcp.f32 %v1036_v48  ;;  %v1293_v48 = vadd.f32 %v3535_v40, %v3582_v13 }
0x11ef   :  { %v2881_v49 = vpop.eup %2880 }
0x11f0   :  { %v1040_v52 = vmul.f32 %v2881_v49, %v941_v3 }
0x1253   :  { %v1043_v50 = vpop.permute.xlu1 %1042 }
0x1254   :  { %v1045_v51 = vmul.f32 %v2881_v49, %v1043_v50 }
0x1256   :  { %1047 = vrot.lane.b32.xlu0 %v1045_v51, %s3204_s25 }
0x12c8   :  { %v1048_v53 = vpop.permute.xlu0 %1047 }
0x12c9   :  { %v3547_v54 = vadd.f32 %v1048_v53, %v1040_v52 }
0x12cb   :  { %2882 = vtanh.f32 %v3547_v54 }
0x12d5   :  { %v2883_v55 = vpop.eup %2882 }
0x12d6   :  { %1053 = vrot.lane.b32.xlu1 %v2883_v55, %s3204_s25 }
0x1348   :  { %v1054_v62 = vpop.permute.xlu1 %1053 }
0x1349   :  { %v1056_v63 = vmul.f32 %v2881_v49, %v1054_v62 }
0x134b   :  { %1058 = vrot.lane.b32.xlu0 %v1056_v63, %s3205_s5 }
0x134f   :  { %1425 = vrot.lane.b32.xlu0 %v1337_v2, %s3204_s25 }
0x13bd   :  { %v1059_v4 = vpop.permute.xlu0 %1058 }
0x13be   :  { %1062 = vst.msk [vmem:[#allocation3 + $0x30] sm:$0xff] %vm157_vm1, %v1059_v4  ;;  %2571 = vmatmul.mubr.msk.f32.vlgmr.msra.gmra.mrb[8].mxu1 %vm157_vm1, %v1059_v4 }
0x13bf   :  { %2758 = vmatpush3.bf16.msra.mxu1 %v3551_v58  ;;  %2601 = vmatprep.mubr.msk.f32.mxu1 %vm3202_vm0, %v3203_v1 }
0x13c0   :  { %2759 = vmatprep.subr.bf16.mxu1 %v3201_v0 }
0x13c1   :  { %v1426_v23 = vpop.permute.xlu0 %1425 }
0x13c3   :  { %2761 = vmatpush3.bf16.msra.mxu1 %v3555_v61 }
0x13c4   :  { %2762 = vmatprep.subr.bf16.mxu1 %v3201_v0 }
0x13c5   :  { %v1184_v8 = vld [vmem:[#allocation3 + $0x30] sm:$0xff] }
0x13c6   :  { %2602 = vmatmul.mubr.msk.f32.vlgmr.msra.gmra.mrb[10].mxu1 %vm157_vm1, %v1335_v7  ;;  %2590 = vmatprep.mubr.msk.f32.mxu0 %vm157_vm1, %v1184_v8 }
0x13c7   :  { %2764 = vmatpush3.bf16.msra.mxu1 %v3551_v58  ;;  %2612 = vmatprep.mubr.msk.f32.mxu1 %vm3202_vm0, %v3203_v1 }
0x13c8   :  { %2765 = vmatprep.subr.bf16.mxu1 %v3201_v0 }
0x13cb   :  { %2767 = vmatpush3.bf16.msra.mxu1 %v3555_v61 }
0x13cc   :  { %2774 = vmatprep.subr.bf16.mxu1 %v3201_v0 }
0x1491   :  { %v1137_v11 = vpop.f32.mrb[8].mxu1 }
0x1492   :  { %v1141_v9 = vadd.f32 %v1137_v11, %v284_v10  ;;  %v2572_v12 = vpop.f32.mrb[9].mxu1 }
0x1493   :  { %v1298_v12 = vadd.f32 %v3582_v13, %v3539_v44 }
0x1494   :  { %v2327_v29 = vmul.f32 -1.442695, %v1141_v9 }
0x1499   :  { %v1412_v16 = vpop.f32.mrb[10].mxu1 }
0x149a   :  { %v1416_v14 = vadd.f32 %v1412_v16, %v1288_v15  ;;  %v2603_v18 = vpop.f32.mrb[11].mxu1 }
0x149c   :  { %2884 = vtanh.f32 %v1416_v14  ;;  %v2338_v3 = vmul.f32 -1.442695, %v1416_v14 }
0x149e   :  { %2886 = vpow2.f32 %v2338_v3 }
0x14a6   :  { %v2885_v19 = vpop.eup %2884 }
0x14a7   :  { %1430 = vrot.lane.b32.xlu1 %v2885_v19, %s3204_s25 }
0x14a8   :  { %v2887_v17 = vpop.eup %2886 }
0x14a9   :  { %v1420_v5 = vadd.f32 1.0, %v2887_v17 }
0x14ab   :  { %2888 = vrcp.f32 %v1420_v5 }
0x14b5   :  { %v2889_v20 = vpop.eup %2888 }
0x14b6   :  { %v1428_v24 = vmul.f32 %v2889_v20, %v1426_v23 }
0x1519   :  { %v1431_v21 = vpop.permute.xlu1 %1430 }
0x151a   :  { %v1433_v22 = vmul.f32 %v2889_v20, %v1431_v21 }
0x151c   :  { %1435 = vrot.lane.b32.xlu1 %v1433_v22, %s3204_s25 }
0x158e   :  { %v1436_v25 = vpop.permute.xlu1 %1435 }
0x158f   :  { %v1438_v26 = vadd.f32 %v1436_v25, %v1428_v24 }
0x1591   :  { %2890 = vtanh.f32 %v1438_v26 }
0x1592   :  { %2892 = vtanh.f32 %v1141_v9 }
0x1593   :  { %2894 = vpow2.f32 %v2327_v29 }
0x159b   :  { %v2891_v27 = vpop.eup %2890 }
0x159c   :  { %1441 = vrot.lane.b32.xlu0 %v2891_v27, %s3204_s25  ;;  %v2893_v28 = vpop.eup %2892 }
0x159d   :  { %v2895_v30 = vpop.eup %2894 }
0x159e   :  { %v1145_v31 = vadd.f32 1.0, %v2895_v30 }
0x15a0   :  { %1151 = vrot.lane.b32.xlu0 %v2893_v28, %s3204_s25  ;;  %2896 = vrcp.f32 %v1145_v31  ;;  %v1303_v28 = vadd.f32 %v3537_v42, %v3582_v13 }
0x15aa   :  { %v2897_v34 = vpop.eup %2896 }
0x15ab   :  { %v1149_v38 = vmul.f32 %v2897_v34, %v3547_v54 }
0x160e   :  { %v1442_v32 = vpop.permute.xlu0 %1441 }
0x160f   :  { %v1444_v33 = vmul.f32 %v2889_v20, %v1442_v32 }
0x1611   :  { %1447 = vrot.lane.b32.xlu1 %v1444_v33, %s3205_s5 }
0x1612   :  { %v1152_v35 = vpop.permute.xlu0 %1151 }
0x1613   :  { %v1154_v36 = vmul.f32 %v2897_v34, %v1152_v35 }
0x1615   :  { %1156 = vrot.lane.b32.xlu0 %v1154_v36, %s3204_s25 }
0x1683   :  { %v1448_v37 = vpop.permute.xlu1 %1447 }
0x1684   :  { %2613 = vmatmul.mubr.msk.f32.vlgmr.msra.gmra.mrb[12].mxu1 %vm157_vm1, %v1448_v37 }
0x1685   :  { %2776 = vmatpush3.bf16.msra.mxu1 %v3551_v58  ;;  %2634 = vmatprep.mubr.msk.f32.mxu1 %vm3202_vm0, %v3203_v1 }
0x1686   :  { %2777 = vmatprep.subr.bf16.mxu1 %v3201_v0 }
0x1687   :  { %v1157_v39 = vpop.permute.xlu0 %1156 }
0x1688   :  { %v3597_v41 = vadd.f32 %v1157_v39, %v1149_v38 }
0x1689   :  { %2779 = vmatpush3.bf16.msra.mxu1 %v3555_v61 }
0x168a   :  { %2898 = vtanh.f32 %v3597_v41  ;;  %2786 = vmatprep.subr.bf16.mxu1 %v3201_v0 }
0x1694   :  { %v2899_v43 = vpop.eup %2898 }
0x1695   :  { %1162 = vrot.lane.b32.xlu0 %v2899_v43, %s3204_s25 }
0x1707   :  { %v1163_v47 = vpop.permute.xlu0 %1162 }
0x1708   :  { %v1165_v6 = vmul.f32 %v2897_v34, %v1163_v47 }
0x170a   :  { %1167 = vrot.lane.b32.xlu0 %v1165_v6, %s3205_s5 }
0x1757   :  { %v1517_v49 = vpop.f32.mrb[12].mxu1 }
0x1758   :  { %v1521_v50 = vadd.f32 %v1517_v49, %v1293_v48  ;;  %v2614_v51 = vpop.f32.mrb[13].mxu1 }
0x175a   :  { %2900 = vtanh.f32 %v1521_v50  ;;  %v2340_v55 = vmul.f32 -1.442695, %v1521_v50  ;;  %v1308_v50 = vadd.f32 %v3582_v13, %v3544_v46 }
0x175c   :  { %2902 = vpow2.f32 %v2340_v55 }
0x1764   :  { %v2901_v52 = vpop.eup %2900 }
0x1765   :  { %1531 = vrot.lane.b32.xlu1 %v2901_v52, %s3204_s25 }
0x1766   :  { %v2903_v40 = vpop.eup %2902 }
0x1767   :  { %v1525_v56 = vadd.f32 1.0, %v2903_v40 }
0x1769   :  { %2904 = vrcp.f32 %v1525_v56 }
0x1773   :  { %v2905_v57 = vpop.eup %2904 }
0x1774   :  { %v1529_v62 = vmul.f32 %v2905_v57, %v1438_v26 }
0x177c   :  { %v1168_v53 = vpop.permute.xlu0 %1167 }
0x177d   :  { %1171 = vst.msk [vmem:[#allocation3 + $0x38] sm:$0xff] %vm157_vm1, %v1168_v53  ;;  %1172 = vst.msk [vmem:[#allocation17] sm:$0xff] %vm157_vm1, %v1168_v53 }
0x1784   :  { %v1185_v54 = vld [vmem:[#allocation3 + $0x38] sm:$0xff] }
0x1785   :  { %2591 = vmatmul.mubr.msk.f32.gmra.mrb[20].mxu0 %vm157_vm1, %v1185_v54 }
0x1786   :  { %2623 = vmatprep.mubr.msk.f32.mxu0 %vm3202_vm0, %v3203_v1 }
0x17d7   :  { %v1532_v59 = vpop.permute.xlu1 %1531 }
0x17d8   :  { %v1534_v60 = vmul.f32 %v2905_v57, %v1532_v59 }
0x17da   :  { %1536 = vrot.lane.b32.xlu1 %v1534_v60, %s3204_s25 }
0x184c   :  { %v1537_v63 = vpop.permute.xlu1 %1536 }
0x184d   :  { %v1539_v2 = vadd.f32 %v1537_v63, %v1529_v62 }
0x184f   :  { %2906 = vtanh.f32 %v1539_v2 }
0x1858   :  { %v3613_v4 = vpop.f32.mrb[20].mxu0 }
0x1859   :  { %v2907_v7 = vpop.eup %2906  ;;  %v3615_v8 = vpop.f32.mrb[21].mxu0 }
0x185a   :  { %1542 = vrot.lane.b32.xlu1 %v2907_v7, %s3204_s25 }
0x18cc   :  { %v1543_v10 = vpop.permute.xlu1 %1542 }
0x18cd   :  { %v1545_v11 = vmul.f32 %v2905_v57, %v1543_v10 }
0x18cf   :  { %1548 = vrot.lane.b32.xlu1 %v1545_v11, %s3205_s5 }
0x1941   :  { %v1549_v9 = vpop.permute.xlu1 %1548 }
0x1942   :  { %2624 = vmatmul.mubr.msk.f32.vlgmr.msra.gmra.mrb[22].mxu0 %vm157_vm1, %v1549_v9  ;;  %v1313_v9 = vadd.f32 %v3542_v45, %v3582_v13 }
0x1943   :  { %2782 = vmatpush3.bf16.msra.mxu0 %v3551_v58  ;;  %2645 = vmatprep.mubr.msk.f32.mxu0 %vm3202_vm0, %v3203_v1 }
0x1944   :  { %2783 = vmatprep.subr.bf16.mxu0 %v3201_v0 }
0x1947   :  { %2785 = vmatpush3.bf16.msra.mxu0 %v3555_v61 }
0x1948   :  { %2792 = vmatprep.subr.bf16.mxu0 %v3201_v0 }
0x1a15   :  { %v1618_v15 = vpop.f32.mrb[22].mxu0 }
0x1a16   :  { %v1622_v16 = vadd.f32 %v1618_v15, %v1298_v12  ;;  %v2625_v14 = vpop.f32.mrb[23].mxu0 }
0x1a18   :  { %2908 = vtanh.f32 %v1622_v16  ;;  %v2342_v19 = vmul.f32 -1.442695, %v1622_v16 }
0x1a1a   :  { %2910 = vpow2.f32 %v2342_v19 }
0x1a22   :  { %v2909_v18 = vpop.eup %2908 }
0x1a23   :  { %1632 = vrot.lane.b32.xlu0 %v2909_v18, %s3204_s25 }
0x1a24   :  { %v2911_v3 = vpop.eup %2910 }
0x1a25   :  { %v1626_v17 = vadd.f32 1.0, %v2911_v3 }
0x1a27   :  { %2912 = vrcp.f32 %v1626_v17 }
0x1a31   :  { %v2913_v5 = vpop.eup %2912 }
0x1a32   :  { %v1630_v22 = vmul.f32 %v2913_v5, %v1539_v2 }
0x1a95   :  { %v1633_v20 = vpop.permute.xlu0 %1632 }
0x1a96   :  { %v1635_v21 = vmul.f32 %v2913_v5, %v1633_v20 }
0x1a98   :  { %1637 = vrot.lane.b32.xlu1 %v1635_v21, %s3204_s25 }
0x1b0a   :  { %v1638_v23 = vpop.permute.xlu1 %1637 }
0x1b0b   :  { %v1640_v44 = vadd.f32 %v1638_v23, %v1630_v22 }
0x1b0d   :  { %2914 = vtanh.f32 %v1640_v44 }
0x1b17   :  { %v2915_v24 = vpop.eup %2914 }
0x1b18   :  { %1643 = vrot.lane.b32.xlu0 %v2915_v24, %s3204_s25  ;;  %v1318_v24 = vadd.f32 %v3582_v13, %v3615_v8 }
0x1b8a   :  { %v1644_v25 = vpop.permute.xlu0 %1643 }
0x1b8b   :  { %v1646_v26 = vmul.f32 %v2913_v5, %v1644_v25 }
0x1b8d   :  { %1649 = vrot.lane.b32.xlu1 %v1646_v26, %s3205_s5 }
0x1bff   :  { %v1650_v27 = vpop.permute.xlu1 %1649 }
0x1c00   :  { %2635 = vmatmul.mubr.msk.f32.vlgmr.msra.gmra.mrb[14].mxu1 %vm157_vm1, %v1650_v27 }
0x1c01   :  { %2788 = vmatpush3.bf16.msra.mxu1 %v3551_v58  ;;  %2656 = vmatprep.mubr.msk.f32.mxu1 %vm3202_vm0, %v3203_v1 }
0x1c02   :  { %2789 = vmatprep.subr.bf16.mxu1 %v3201_v0 }
0x1c05   :  { %2791 = vmatpush3.bf16.msra.mxu1 %v3555_v61 }
0x1c06   :  { %2798 = vmatprep.subr.bf16.mxu1 %v3201_v0 }
0x1cd3   :  { %v1719_v29 = vpop.f32.mrb[14].mxu1 }
0x1cd4   :  { %v1723_v30 = vadd.f32 %v1719_v29, %v1303_v28  ;;  %v2636_v31 = vpop.f32.mrb[15].mxu1 }
0x1cd6   :  { %2916 = vtanh.f32 %v1723_v30  ;;  %v2344_v33 = vmul.f32 -1.442695, %v1723_v30 }
0x1cd8   :  { %2918 = vpow2.f32 %v2344_v33 }
0x1ce0   :  { %v2917_v32 = vpop.eup %2916 }
0x1ce1   :  { %1733 = vrot.lane.b32.xlu0 %v2917_v32, %s3204_s25 }
0x1ce2   :  { %v2919_v34 = vpop.eup %2918 }
0x1ce3   :  { %v1727_v35 = vadd.f32 1.0, %v2919_v34 }
0x1ce5   :  { %2920 = vrcp.f32 %v1727_v35 }
0x1cef   :  { %v2921_v36 = vpop.eup %2920 }
0x1cf0   :  { %v1731_v39 = vmul.f32 %v2921_v36, %v1640_v44 }
0x1d53   :  { %v1734_v37 = vpop.permute.xlu0 %1733 }
0x1d54   :  { %v1736_v38 = vmul.f32 %v2921_v36, %v1734_v37 }
0x1d56   :  { %1738 = vrot.lane.b32.xlu1 %v1736_v38, %s3204_s25 }
0x1dc8   :  { %v1739_v43 = vpop.permute.xlu1 %1738 }
0x1dc9   :  { %v1741_v42 = vadd.f32 %v1739_v43, %v1731_v39  ;;  %v1323_v43 = vadd.f32 %v3613_v4, %v3582_v13  ;;  %v2164_v4 = vld [vmem:[%s3758_s9] sm:$0xff] }
0x1dcb   :  { %2922 = vtanh.f32 %v1741_v42 }
0x1dd5   :  { %v2923_v47 = vpop.eup %2922 }
0x1dd6   :  { %1744 = vrot.lane.b32.xlu0 %v2923_v47, %s3204_s25 }
0x1e48   :  { %v1745_v6 = vpop.permute.xlu0 %1744 }
0x1e49   :  { %v1747_v48 = vmul.f32 %v2921_v36, %v1745_v6 }
0x1e4b   :  { %1750 = vrot.lane.b32.xlu1 %v1747_v48, %s3205_s5 }
0x1ebd   :  { %v1751_v49 = vpop.permute.xlu1 %1750 }
0x1ebe   :  { %2646 = vmatmul.mubr.msk.f32.vlgmr.msra.gmra.mrb[24].mxu0 %vm157_vm1, %v1751_v49 }
0x1ebf   :  { %2794 = vmatpush3.bf16.msra.mxu0 %v3551_v58  ;;  %2667 = vmatprep.mubr.msk.f32.mxu0 %vm3202_vm0, %v3203_v1 }
0x1ec0   :  { %2795 = vmatprep.subr.bf16.mxu0 %v3201_v0 }
0x1ec3   :  { %2797 = vmatpush3.bf16.msra.mxu0 %v3555_v61 }
0x1ec4   :  { %2804 = vmatprep.subr.bf16.mxu0 %v3201_v0 }
0x1f91   :  { %v1820_v51 = vpop.f32.mrb[24].mxu0 }
0x1f92   :  { %v1824_v52 = vadd.f32 %v1820_v51, %v1308_v50  ;;  %v2647_v53 = vpop.f32.mrb[25].mxu0 }
0x1f94   :  { %2924 = vtanh.f32 %v1824_v52  ;;  %v2346_v55 = vmul.f32 -1.442695, %v1824_v52 }
0x1f96   :  { %2926 = vpow2.f32 %v2346_v55 }
0x1f9e   :  { %v2925_v54 = vpop.eup %2924 }
0x1f9f   :  { %1834 = vrot.lane.b32.xlu0 %v2925_v54, %s3204_s25 }
0x1fa0   :  { %v2927_v40 = vpop.eup %2926 }
0x1fa1   :  { %v1828_v56 = vadd.f32 1.0, %v2927_v40 }
0x1fa3   :  { %2928 = vrcp.f32 %v1828_v56  ;;  %v2165_v56 = vld [vmem:[%s3758_s9 + $0x8] sm:$0xff] }
0x1fad   :  { %v2929_v57 = vpop.eup %2928 }
0x1fae   :  { %v1832_v62 = vmul.f32 %v2929_v57, %v1741_v42 }
0x2011   :  { %v1835_v59 = vpop.permute.xlu0 %1834 }
0x2012   :  { %v1837_v60 = vmul.f32 %v2929_v57, %v1835_v59  ;;  %v2805_v59 = vpack.c.bf16 %v2165_v56, %v2164_v4 }
0x2014   :  { %1839 = vrot.lane.b32.xlu1 %v1837_v60, %s3204_s25  ;;  %v2167_v60 = vld [vmem:[%s3758_s9 + $0x18] sm:$0xff] }
0x2086   :  { %v1840_v63 = vpop.permute.xlu1 %1839 }
0x2087   :  { %v1842_v46 = vadd.f32 %v1840_v63, %v1832_v62 }
0x2089   :  { %2930 = vtanh.f32 %v1842_v46 }
0x2093   :  { %v2931_v2 = vpop.eup %2930 }
0x2094   :  { %1845 = vrot.lane.b32.xlu0 %v2931_v2, %s3204_s25 }
0x2106   :  { %v1846_v7 = vpop.permute.xlu0 %1845 }
0x2107   :  { %v1848_v10 = vmul.f32 %v2929_v57, %v1846_v7  ;;  %v2166_v57 = vld [vmem:[%s3758_s9 + $0x10] sm:$0xff]  ;;  %s3207_s9 = smov [#allocation17]  }
0x2108   :  { %v2808_v62 = vpack.c.bf16 %v2167_v60, %v2166_v57  ;;  %s2269_s1 = sshll.u32 %s3207_s9, 4  ;;  %s2270_s1 = int_to_ptr.vmem [resolvable:$true] %s2269_s1 }
0x2109   :  { %1851 = vrot.lane.b32.xlu1 %v1848_v10, %s3205_s5  ;;  %s3114_s26 = scalar_lea.vmem %s2270_s1, 256  ;;  %p3119_p1 = scmp.lt.s32.totalorder %s2270_s1, %s2270_s1 }
0x210a   :  { %p3115_p0 = scmp.ne.s32.totalorder %s2270_s1, %s3114_s26  ;;  %p3120_p2 = scmp.lt.s32.totalorder %s3114_s26, %s3114_s26 }
0x210c   :  { %p3121_p3 = por %p3120_p2, %p3119_p1 }
0x210e   :  { %p3122_p4 = pnand %p3121_p3, %p3115_p0 }
0x217b   :  { %v1852_v11 = vpop.permute.xlu1 %1851 }
0x217c   :  { %2657 = vmatmul.mubr.msk.f32.vlgmr.msra.gmra.mrb[16].mxu1 %vm157_vm1, %v1852_v11 }
0x217d   :  { %2800 = vmatpush3.bf16.msra.mxu1 %v3551_v58  ;;  %2678 = vmatprep.mubr.msk.f32.mxu1 %vm3202_vm0, %v3203_v1 }
0x217e   :  { %2801 = vmatprep.subr.bf16.mxu1 %v3201_v0 }
0x2181   :  { %2803 = vmatpush3.bf16.msra.mxu1 %v3555_v61 }
0x224f   :  { %v1921_v12 = vpop.f32.mrb[16].mxu1 }
0x2250   :  { %v1925_v15 = vadd.f32 %v1921_v12, %v1313_v9  ;;  %v2658_v16 = vpop.f32.mrb[17].mxu1 }
0x2252   :  { %2932 = vtanh.f32 %v1925_v15  ;;  %v2348_v18 = vmul.f32 -1.442695, %v1925_v15 }
0x2254   :  { %2934 = vpow2.f32 %v2348_v18 }
0x225c   :  { %v2933_v14 = vpop.eup %2932 }
0x225d   :  { %1935 = vrot.lane.b32.xlu0 %v2933_v14, %s3204_s25 }
0x225e   :  { %v2935_v58 = vpop.eup %2934 }
0x225f   :  { %v1929_v19 = vadd.f32 1.0, %v2935_v58 }
0x2261   :  { %2936 = vrcp.f32 %v1929_v19 }
0x226b   :  { %v2937_v3 = vpop.eup %2936 }
0x226c   :  { %v1933_v61 = vmul.f32 %v2937_v3, %v1842_v46 }
0x22cf   :  { %v1936_v17 = vpop.permute.xlu0 %1935 }
0x22d0   :  { %v1938_v5 = vmul.f32 %v2937_v3, %v1936_v17 }
0x22d2   :  { %1940 = vrot.lane.b32.xlu1 %v1938_v5, %s3204_s25 }
0x2344   :  { %v1941_v20 = vpop.permute.xlu1 %1940 }
0x2345   :  { %v1943_v45 = vadd.f32 %v1941_v20, %v1933_v61 }
0x2347   :  { %2938 = vtanh.f32 %v1943_v45 }
0x2351   :  { %v2939_v21 = vpop.eup %2938 }
0x2352   :  { %1946 = vrot.lane.b32.xlu0 %v2939_v21, %s3204_s25 }
0x23c4   :  { %v1947_v22 = vpop.permute.xlu0 %1946 }
0x23c5   :  { %v1949_v23 = vmul.f32 %v2937_v3, %v1947_v22 }
0x23c7   :  { %1952 = vrot.lane.b32.xlu1 %v1949_v23, %s3205_s5 }
0x2439   :  { %v1953_v44 = vpop.permute.xlu1 %1952 }
0x243a   :  { %2668 = vmatmul.mubr.msk.f32.vlgmr.msra.gmra.mrb[26].mxu0 %vm157_vm1, %v1953_v44 }
0x243b   :  { %2689 = vmatprep.mubr.msk.f32.mxu0 %vm3202_vm0, %v3203_v1  ;;  %2806 = vmatpush3.bf16.msra.mxu0 %v2805_v59 }
0x243c   :  { %2807 = vmatprep.subr.bf16.mxu0 %v3201_v0 }
0x243f   :  { %2809 = vmatpush3.bf16.msra.mxu0 %v2808_v62 }
0x250d   :  { %v2022_v25 = vpop.f32.mrb[26].mxu0 }
0x250e   :  { %v2026_v26 = vadd.f32 %v2022_v25, %v1318_v24  ;;  %v2669_v27 = vpop.f32.mrb[27].mxu0 }
0x2510   :  { %2940 = vtanh.f32 %v2026_v26  ;;  %v2350_v29 = vmul.f32 -1.442695, %v2026_v26 }
0x2512   :  { %2942 = vpow2.f32 %v2350_v29 }
0x251a   :  { %v2941_v28 = vpop.eup %2940 }
0x251b   :  { %2036 = vrot.lane.b32.xlu0 %v2941_v28, %s3204_s25 }
0x251c   :  { %v2943_v30 = vpop.eup %2942 }
0x251d   :  { %v2030_v31 = vadd.f32 1.0, %v2943_v30 }
0x251f   :  { %2944 = vrcp.f32 %v2030_v31 }
0x2529   :  { %v2945_v32 = vpop.eup %2944 }
0x252a   :  { %v2034_v1 = vmul.f32 %v2945_v32, %v1943_v45 }
0x258d   :  { %v2037_v33 = vpop.permute.xlu0 %2036 }
0x258e   :  { %v2039_v34 = vmul.f32 %v2945_v32, %v2037_v33 }
0x2590   :  { %2041 = vrot.lane.b32.xlu1 %v2039_v34, %s3204_s25 }
0x2602   :  { %v2042_v35 = vpop.permute.xlu1 %2041 }
0x2603   :  { %v2044_v8 = vadd.f32 %v2042_v35, %v2034_v1 }
0x2605   :  { %2946 = vtanh.f32 %v2044_v8 }
0x260f   :  { %v2947_v36 = vpop.eup %2946 }
0x2610   :  { %2047 = vrot.lane.b32.xlu0 %v2947_v36, %s3204_s25 }
0x2682   :  { %v2048_v37 = vpop.permute.xlu0 %2047 }
0x2683   :  { %v2050_v38 = vmul.f32 %v2945_v32, %v2048_v37 }
0x2685   :  { %2053 = vrot.lane.b32.xlu1 %v2050_v38, %s3205_s5 }
0x26f7   :  { %v2054_v39 = vpop.permute.xlu1 %2053 }
0x26f8   :  { %2679 = vmatmul.mubr.msk.f32.vlgmr.msra.gmra.mrb[18].mxu1 %vm157_vm1, %v2054_v39 }
0x27cb   :  { %v2123_v42 = vpop.f32.mrb[18].mxu1 }
0x27cc   :  { %v2127_v47 = vadd.f32 %v2123_v42, %v1323_v43  ;;  %v2680_v6 = vpop.f32.mrb[19].mxu1 }
0x27ce   :  { %2948 = vtanh.f32 %v2127_v47  ;;  %v2352_v49 = vmul.f32 -1.442695, %v2127_v47 }
0x27d0   :  { %2950 = vpow2.f32 %v2352_v49 }
0x27d8   :  { %v2949_v48 = vpop.eup %2948 }
0x27d9   :  { %2137 = vrot.lane.b32.xlu0 %v2949_v48, %s3204_s25 }
0x27da   :  { %v2951_v50 = vpop.eup %2950 }
0x27db   :  { %v2131_v51 = vadd.f32 1.0, %v2951_v50 }
0x27dd   :  { %2952 = vrcp.f32 %v2131_v51 }
0x27e7   :  { %v2953_v52 = vpop.eup %2952 }
0x27e8   :  { %v2135_v55 = vmul.f32 %v2953_v52, %v2044_v8 }
0x284b   :  { %v2138_v53 = vpop.permute.xlu0 %2137 }
0x284c   :  { %v2140_v54 = vmul.f32 %v2953_v52, %v2138_v53 }
0x284e   :  { %2142 = vrot.lane.b32.xlu1 %v2140_v54, %s3204_s25 }
0x28c0   :  { %v2143_v40 = vpop.permute.xlu1 %2142 }
0x28c1   :  { %v2145_v13 = vadd.f32 %v2143_v40, %v2135_v55 }
0x28c3   :  { %2954 = vtanh.f32 %v2145_v13 }
0x28cd   :  { %v2955_v63 = vpop.eup %2954 }
0x28ce   :  { %2148 = vrot.lane.b32.xlu0 %v2955_v63, %s3204_s25 }
0x28d2   :  { %1174 = vrot.lane.b32.xlu0 %v3597_v41, %s3206_s16 }
0x2940   :  { %v2149_v46 = vpop.permute.xlu0 %2148 }
0x2941   :  { %v2151_v2 = vmul.f32 %v2953_v52, %v2149_v46 }
0x2943   :  { %2153 = vrot.lane.b32.xlu1 %v2151_v2, %s3205_s5 }
0x2944   :  { %v1175_v7 = vpop.permute.xlu0 %1174 }
0x2945   :  { %1177 = vst.msk [vmem:[#allocation19] sm:$0xff] %vm157_vm1, %v1175_v7 }
0x2947   :  { %2159 = vrot.lane.b32.xlu1 %v2145_v13, %s3206_s16 }
0x29b5   :  { %v2154_v10 = vpop.permute.xlu1 %2153 }
0x29b6   :  { %2157 = vst.msk [vmem:[#allocation17 + $0x8] sm:$0xff] %vm157_vm1, %v2154_v10  ;;  %2690 = vmatmul.mubr.msk.f32.vlgmr.msra.gmra.mrb[28].mxu0 %vm157_vm1, %v2154_v10 }
0x29b9   :  { %v2160_v0 = vpop.permute.xlu1 %2159 }
0x29ba   :  { %2163 = vst.msk [vmem:[#allocation19 + $0x8] sm:$0xff] %vm157_vm1, %v2160_v0 }
0x29bb   :  { %3125 = shalt.err (!%p3122_p4)
}
0x29bc   :  { %s3126_s22 = scalar_lea.hbm %s3761_s12, 256 }
0x29bd   :  { %p3127_p5 = scmp.ne.s32.totalorder %s3761_s12, %s3126_s22  ;;  %p3130_p6 = scmp.lt.u32.totalorder %s3126_s22, %s3761_s12 }
0x29bf   :  { %p3132_p7 = pnand %p3130_p6, %p3127_p5 }
0x29c1   :  { %3135 = shalt.err (!%p3132_p7)
}
0x29c2   :  { %2275 = dma.vmem_to_hbm [thread:$0]  %s2270_s1, 256, %s3761_s12, [#allocation18], %s3194_s20, %s3194_s20, %s3195_s21  }
0x29c3   :  { %s3208_s25 = smov [#allocation19]  }
0x29c4   :  { %s2281_s5 = sshll.u32 %s3208_s25, 4  ;;  %s2282_s5 = int_to_ptr.vmem [resolvable:$true] %s2281_s5 }
0x29c5   :  { %s3136_s6 = scalar_lea.vmem %s2282_s5, 256  ;;  %p3141_p9 = scmp.lt.s32.totalorder %s2282_s5, %s2282_s5 }
0x29c6   :  { %p3137_p8 = scmp.ne.s32.totalorder %s2282_s5, %s3136_s6  ;;  %p3142_p10 = scmp.lt.s32.totalorder %s3136_s6, %s3136_s6 }
0x29c8   :  { %p3143_p11 = por %p3142_p10, %p3141_p9 }
0x29ca   :  { %p3144_p12 = pnand %p3143_p11, %p3137_p8 }
0x29cc   :  { %3147 = shalt.err (!%p3144_p12)
}
0x29cd   :  { %s3148_s27 = scalar_lea.hbm %s3762_s13, 256 }
0x29ce   :  { %p3149_p13 = scmp.ne.s32.totalorder %s3762_s13, %s3148_s27  ;;  %p3152_p0 = scmp.lt.u32.totalorder %s3148_s27, %s3762_s13 }
0x29d0   :  { %p3154_p1 = pnand %p3152_p0, %p3149_p13 }
0x29d2   :  { %3157 = shalt.err (!%p3154_p1)
}
0x29d3   :  { %2287 = dma.vmem_to_hbm [thread:$0]  %s2282_s5, 256, %s3762_s13, [#allocation18], %s3194_s20, %s3194_s20, %s3195_s21  }
0x29d4   :  { %v2353_v41 = vld [vmem:[%s3759_s10] ss:$0 sm:$0xff]  ;;  %s3209_s9 = smov [#allocation16]  }
0x29d5   :  { %s2260_s1 = sshll.u32 %s3209_s9, 4  ;;  %s2261_s1 = int_to_ptr.vmem [resolvable:$true] %s2260_s1 }
0x29d6   :  { %s3158_s26 = scalar_lea.vmem %s2261_s1, 128  ;;  %p3163_p3 = scmp.lt.s32.totalorder %s2261_s1, %s2261_s1 }
0x29d7   :  { %p3159_p2 = scmp.ne.s32.totalorder %s2261_s1, %s3158_s26  ;;  %p3164_p4 = scmp.lt.s32.totalorder %s3158_s26, %s3158_s26 }
0x29d9   :  { %p3165_p5 = por %p3164_p4, %p3163_p3 }
0x29db   :  { %p3166_p6 = pnand %p3165_p5, %p3159_p2 }
0x2a89   :  { %v2243_v11 = vpop.f32.mrb[28].mxu0 }
0x2a8a   :  { %v2244_v9 = vadd.f32 %v2353_v41, %v2243_v11  ;;  %v2691_v12 = vpop.f32.mrb[29].mxu0 }
0x2a8c   :  { %v2355_v15 = vmul.f32 -1.442695, %v2244_v9 }
0x2a8e   :  { %2956 = vpow2.f32 %v2355_v15 }
0x2a98   :  { %v2957_v16 = vpop.eup %2956 }
0x2a99   :  { %v2250_v14 = vadd.f32 1.0, %v2957_v16 }
0x2a9b   :  { %2958 = vrcp.f32 %v2250_v14 }
0x2aa5   :  { %v2959_v18 = vpop.eup %2958 }
0x2aa6   :  { %2253 = vst [vmem:[#allocation16] sm:$0xff] %v2959_v18 }
0x2aa7   :  { %3169 = shalt.err (!%p3166_p6)
}
0x2aa8   :  { %s3170_s20 = scalar_lea.hbm %s3760_s11, 128 }
0x2aa9   :  { %p3171_p7 = scmp.ne.s32.totalorder %s3760_s11, %s3170_s20  ;;  %p3174_p8 = scmp.lt.u32.totalorder %s3170_s20, %s3760_s11 }
0x2aab   :  { %p3176_p9 = pnand %p3174_p8, %p3171_p7 }
0x2aad   :  { %3179 = shalt.err (!%p3176_p9)
}
0x2aae   :  { %2263 = dma.vmem_to_hbm [thread:$0]  %s2261_s1, 128, %s3760_s11, [#allocation6]  }
0x2aaf   :  { %3188 = dma.done.wait [#allocation6], 128  }
0x2ab0   :  { %3189 = vsyncadd [#allocation6], 4294967168 }
0x2ab1   :  { %3190 = dma.done.wait [#allocation18], 512  }
0x2ab2   :  { %3191 = vsyncadd [#allocation18], 4294966784 }
0x2ab3   :  { %2297 = vsyncpa [#allocation5], 1 }
0x2ab4   :  { %2298 = vsyncpa [#allocation8], 1 }
0x2ab5   :  { %2299 = vsyncpa [#allocation11], 1 }
0x2ab6   :  { %2300 = vsyncpa [#allocation14], 1 }
0x2ab7   :  { %2301 = vsyncpa [#allocation6], 1 }
0x2ab8   :  { %2302 = vsyncpa [#allocation18], 1 }

</bundles_post_ra>
